<compile_context>
chip_gen: v6e
topology: v6e:2x2x1
jax: 0.10.0
libtpu: 0.0.40
codegen_flags: <defaults>
</compile_context>

<pallas_src>
import jax
import jax.numpy as jnp
from jax.experimental import pallas as pl
from jax.experimental.pallas import tpu as pltpu


def _round_up(x, m):
    return (x + m - 1) // m * m


# ---------------------------------------------------------------------------
# Kernels
# ---------------------------------------------------------------------------
def _gated_tanh_kernel_single_k(x_ref, w1_ref, w2_ref, b1_ref, b2_ref, o_ref):
    """Whole K in one tile: two MXU dots -> bias -> tanh * sigmoid -> store.

    x_ref: (tm, K); w*_ref: (K, tn); b*_ref: (1, tn); o_ref: (tm, tn).
    Grid is (j, i) with i fastest, so the weight/bias tiles (indexed only by
    j) stay VMEM-resident while M tiles stream.
    """
    x = x_ref[...].astype(jnp.bfloat16)
    y = jnp.dot(x, w1_ref[...].astype(jnp.bfloat16),
                preferred_element_type=jnp.float32) + b1_ref[...]
    g = jnp.dot(x, w2_ref[...].astype(jnp.bfloat16),
                preferred_element_type=jnp.float32) + b2_ref[...]
    o_ref[...] = (jnp.tanh(y) * jax.nn.sigmoid(g)).astype(o_ref.dtype)


def _gated_tanh_kernel_acc(x_ref, w1_ref, w2_ref, b1_ref, b2_ref, o_ref,
                           acc1_ref, acc2_ref):
    """Large-K fallback: f32 accumulators resident across the k grid axis."""
    k = pl.program_id(2)

    @pl.when(k == 0)
    def _init():
        acc1_ref[...] = jnp.zeros_like(acc1_ref)
        acc2_ref[...] = jnp.zeros_like(acc2_ref)

    x = x_ref[...].astype(jnp.bfloat16)
    acc1_ref[...] += jnp.dot(x, w1_ref[...].astype(jnp.bfloat16),
                             preferred_element_type=jnp.float32)
    acc2_ref[...] += jnp.dot(x, w2_ref[...].astype(jnp.bfloat16),
                             preferred_element_type=jnp.float32)

    @pl.when(k == pl.num_programs(2) - 1)
    def _finalize():
        y = jnp.tanh(acc1_ref[...] + b1_ref[...])
        g = jax.nn.sigmoid(acc2_ref[...] + b2_ref[...])
        o_ref[...] = (y * g).astype(o_ref.dtype)


# ---------------------------------------------------------------------------
# Wrapper
# ---------------------------------------------------------------------------
def gated_hyperbolic_tangent(x, w1, b1, w2, b2):
    """x: (M, K); w1, w2: (K, N) (transpose of torch Linear.weight); b*: (N,).

    Returns (M, N) = tanh(x @ w1 + b1) * sigmoid(x @ w2 + b2).
    """
    M, K = x.shape
    Kw, N = w1.shape
    assert Kw == K and w2.shape == (K, N) and b1.shape == (N,) and b2.shape == (N,)

    # Tiny problems: pad-to-128 + kernel launch is pure overhead; let XLA fuse.
    if M * N * K < 128 * 128 * 128:
        return jnp.tanh(x @ w1 + b1) * jax.nn.sigmoid(x @ w2 + b2)

    # --- tile selection (hardware aligned, VMEM-safe for v5e/v6e/v7x) -------
    M_pad = _round_up(M, 128)
    tm = 256 if M_pad % 256 == 0 else 128
    N_pad = _round_up(N, 128)
    tn = 256 if N_pad % 256 == 0 else 128
    K_pad = _round_up(K, 128)

    single_k = K_pad <= 2048
    if single_k:
        tk = K_pad
    else:
        tk = next(t for t in (2048, 1024, 512, 256, 128) if K_pad % t == 0)

    # v7x megacore: guarantee >= 2 parallel (i, j) tiles so both TCs get work.
    if (M_pad // tm) * (N_pad // tn) == 1:
        if N_pad >= 256:
            tn = 128
        elif M_pad >= 256:
            tm = 128

    n_i = M_pad // tm
    n_j = N_pad // tn

    # --- zero-pad operands (padding is benign: tanh(0)*sigmoid(0)=0, sliced) -
    def pad2(a, rows, cols):
        return a if (rows == 0 and cols == 0) else jnp.pad(a, ((0, rows), (0, cols)))

    xp = pad2(x, M_pad - M, K_pad - K)
    w1p = pad2(w1, K_pad - K, N_pad - N)
    w2p = pad2(w2, K_pad - K, N_pad - N)
    b1p = (jnp.pad(b1, (0, N_pad - N)) if N_pad != N else b1).reshape(1, N_pad)
    b2p = (jnp.pad(b2, (0, N_pad - N)) if N_pad != N else b2).reshape(1, N_pad)

    x_item = jnp.dtype(x.dtype).itemsize
    w_item = jnp.dtype(w1.dtype).itemsize

    if single_k:
        # Grid (j, i): i fastest -> weight/bias tiles (indexed by j only) stay
        # resident in VMEM while M tiles stream; weights are read from HBM once.
        grid = (n_j, n_i)
        kernel = _gated_tanh_kernel_single_k
        in_specs = [
            pl.BlockSpec((tm, K_pad), lambda j, i: (i, 0)),   # x
            pl.BlockSpec((K_pad, tn), lambda j, i: (0, j)),   # w1
            pl.BlockSpec((K_pad, tn), lambda j, i: (0, j)),   # w2
            pl.BlockSpec((1, tn), lambda j, i: (0, j)),       # b1
            pl.BlockSpec((1, tn), lambda j, i: (0, j)),       # b2
        ]
        out_specs = pl.BlockSpec((tm, tn), lambda j, i: (i, j))
        scratch_shapes = []
        dim_sem = ("parallel", "parallel")
        bytes_accessed = (
            M_pad * K_pad * x_item * n_j          # x re-streamed once per N tile
            + 2 * K_pad * N_pad * w_item          # weights read once (resident over i)
            + M_pad * N_pad * x_item              # output write
        )
    else:
        grid = (n_j, n_i, K_pad // tk)
        kernel = _gated_tanh_kernel_acc
        in_specs = [
            pl.BlockSpec((tm, tk), lambda j, i, k: (i, k)),   # x
            pl.BlockSpec((tk, tn), lambda j, i, k: (k, j)),   # w1
            pl.BlockSpec((tk, tn), lambda j, i, k: (k, j)),   # w2
            pl.BlockSpec((1, tn), lambda j, i, k: (0, j)),    # b1
            pl.BlockSpec((1, tn), lambda j, i, k: (0, j)),    # b2
        ]
        out_specs = pl.BlockSpec((tm, tn), lambda j, i, k: (i, j))
        scratch_shapes = [pltpu.VMEM((tm, tn), jnp.float32),
                          pltpu.VMEM((tm, tn), jnp.float32)]
        dim_sem = ("parallel", "parallel", "arbitrary")
        bytes_accessed = (
            M_pad * K_pad * x_item * n_j          # x revisited per N tile
            + 2 * K_pad * N_pad * w_item * n_i    # weights revisited per M tile
            + M_pad * N_pad * x_item              # output write
        )

    cost = pl.CostEstimate(
        flops=2 * 2 * M_pad * N_pad * K_pad,      # two M x N x K matmuls
        transcendentals=2 * M_pad * N_pad,        # tanh + sigmoid
        bytes_accessed=int(bytes_accessed),
    )

    out_padded = pl.pallas_call(
        kernel,
        out_shape=jax.ShapeDtypeStruct((M_pad, N_pad), x.dtype),
        grid=grid,
        in_specs=in_specs,
        out_specs=out_specs,
        scratch_shapes=scratch_shapes,
        compiler_params=pltpu.CompilerParams(
            dimension_semantics=dim_sem,
            # Tiles are capped so double-buffered usage stays <= ~13 MiB:
            # safe on v7x (64 MiB VMEM) as well as v5e/v6e (128 MiB).
            vmem_limit_bytes=48 * 1024 * 1024,
        ),
        cost_estimate=cost,
    )(xp, w1p, w2p, b1p, b2p)

    if M_pad == M and N_pad == N:
        return out_padded
    return out_padded[:M, :N]


if __name__ == "__main__":
    key = jax.random.PRNGKey(0)
    kx, kw1, kb1, kw2, kb2 = jax.random.split(key, 5)

    # Medium shape: exercises the Pallas path (grid (2, 2), single K tile).
    M, K, N = 256, 384, 512
    bound = 1.0 / (K ** 0.5)
    x = jax.random.normal(kx, (M, K), dtype=jnp.float32)
    # PyTorch Linear init: uniform(-1/sqrt(K), 1/sqrt(K))
    w1 = jax.random.uniform(kw1, (K, N), jnp.float32, -bound, bound)
    b1 = jax.random.uniform(kb1, (N,), jnp.float32, -bound, bound)
    w2 = jax.random.uniform(kw2, (K, N), jnp.float32, -bound, bound)
    b2 = jax.random.uniform(kb2, (N,), jnp.float32, -bound, bound)

    fn = jax.jit(gated_hyperbolic_tangent)
    out = jax.block_until_ready(fn(x, w1, b1, w2, b2))
    assert out.shape == (M, N)

    # Reference with the same bf16-operand / f32-accumulate MXU math.
    def ref_bf16(x, w1, b1, w2, b2):
        xb = x.astype(jnp.bfloat16)
        y = jnp.dot(xb, w1.astype(jnp.bfloat16),
                    preferred_element_type=jnp.float32) + b1
        g = jnp.dot(xb, w2.astype(jnp.bfloat16),
                    preferred_element_type=jnp.float32) + b2
        return jnp.tanh(y) * jax.nn.sigmoid(g)

    ref_b = ref_bf16(x, w1, b1, w2, b2)
    ref_f = jnp.tanh(x @ w1 + b1) * jax.nn.sigmoid(x @ w2 + b2)
    assert jnp.allclose(out, ref_b, atol=2e-4, rtol=2e-4), \
        float(jnp.max(jnp.abs(out - ref_b)))
    assert jnp.allclose(out, ref_f, atol=3e-2, rtol=3e-2), \
        float(jnp.max(jnp.abs(out - ref_f)))

    # Tiny shape matching the original PyTorch demo: exercises the jnp fast path.
    m2, k2, n2 = 8, 32, 32
    x2 = jax.random.normal(kx, (m2, k2), dtype=jnp.float32)
    w1s, b1s = w1[:k2, :n2], b1[:n2]
    w2s, b2s = w2[:k2, :n2], b2[:n2]
    out2 = jax.block_until_ready(
        jax.jit(gated_hyperbolic_tangent)(x2, w1s, b1s, w2s, b2s))
    ref2 = jnp.tanh(x2 @ w1s + b1s) * jax.nn.sigmoid(x2 @ w2s + b2s)
    assert jnp.allclose(out2, ref2, atol=1e-5, rtol=1e-5)

    print("KERNEL_OK")
</pallas_src>

<mosaic_0001>
module attributes {stable_mosaic.version = 11 : i64} {
  func.func @_gated_tanh_kernel_single_k(%arg0: i32, %arg1: i32, %arg2: memref<256x384xf32, #tpu.memory_space<vmem>>, %arg3: memref<384x256xf32, #tpu.memory_space<vmem>>, %arg4: memref<384x256xf32, #tpu.memory_space<vmem>>, %arg5: memref<1x256xf32, #tpu.memory_space<vmem>>, %arg6: memref<1x256xf32, #tpu.memory_space<vmem>>, %arg7: memref<256x256xf32, #tpu.memory_space<vmem>>) attributes {dimension_semantics = [#tpu.dimension_semantics<parallel>, #tpu.dimension_semantics<parallel>], iteration_bounds = array<i64: 2, 1>, scalar_prefetch = 0 : i64, scratch_operands = 0 : i64, tpu.core_type = #tpu.core_type<tc>, window_params = [{transform_indices = @transform_0, window_bounds = array<i64: 256, 384>}, {transform_indices = @transform_1, window_bounds = array<i64: 384, 256>}, {transform_indices = @transform_2, window_bounds = array<i64: 384, 256>}, {transform_indices = @transform_3, window_bounds = array<i64: 1, 256>}, {transform_indices = @transform_4, window_bounds = array<i64: 1, 256>}, {transform_indices = @transform_5, window_bounds = array<i64: 256, 256>}]} {
    %c0 = arith.constant 0 : index
    %c0_0 = arith.constant 0 : index
    %0 = vector.load %arg2[%c0, %c0_0] : memref<256x384xf32, #tpu.memory_space<vmem>>, vector<256x384xf32>
    %1 = arith.truncf %0 : vector<256x384xf32> to vector<256x384xbf16>
    %c0_1 = arith.constant 0 : index
    %c0_2 = arith.constant 0 : index
    %2 = vector.load %arg3[%c0_1, %c0_2] : memref<384x256xf32, #tpu.memory_space<vmem>>, vector<384x256xf32>
    %3 = arith.truncf %2 : vector<384x256xf32> to vector<384x256xbf16>
    %cst = arith.constant dense<0.000000e+00> : vector<256x256xf32>
    %4 = tpu.matmul %1, %3, %cst {dimension_numbers = #tpu.dot_dimension_numbers<[1], [0], [0], [1], [0, 0, 1, 1], [], []>} : vector<256x384xbf16>, vector<384x256xbf16>, vector<256x256xf32> -> vector<256x256xf32>
    %c0_3 = arith.constant 0 : index
    %c0_4 = arith.constant 0 : index
    %5 = vector.load %arg5[%c0_3, %c0_4] : memref<1x256xf32, #tpu.memory_space<vmem>>, vector<1x256xf32>
    %6 = vector.broadcast %5 : vector<1x256xf32> to vector<256x256xf32>
    %7 = arith.addf %4, %6 : vector<256x256xf32>
    %c0_5 = arith.constant 0 : index
    %c0_6 = arith.constant 0 : index
    %8 = vector.load %arg4[%c0_5, %c0_6] : memref<384x256xf32, #tpu.memory_space<vmem>>, vector<384x256xf32>
    %9 = arith.truncf %8 : vector<384x256xf32> to vector<384x256xbf16>
    %cst_7 = arith.constant dense<0.000000e+00> : vector<256x256xf32>
    %10 = tpu.matmul %1, %9, %cst_7 {dimension_numbers = #tpu.dot_dimension_numbers<[1], [0], [0], [1], [0, 0, 1, 1], [], []>} : vector<256x384xbf16>, vector<384x256xbf16>, vector<256x256xf32> -> vector<256x256xf32>
    %c0_8 = arith.constant 0 : index
    %c0_9 = arith.constant 0 : index
    %11 = vector.load %arg6[%c0_8, %c0_9] : memref<1x256xf32, #tpu.memory_space<vmem>>, vector<1x256xf32>
    %12 = vector.broadcast %11 : vector<1x256xf32> to vector<256x256xf32>
    %13 = arith.addf %10, %12 : vector<256x256xf32>
    %14 = math.tanh %7 : vector<256x256xf32>
    %15 = arith.negf %13 : vector<256x256xf32>
    %16 = math.exp %15 : vector<256x256xf32>
    %cst_10 = arith.constant 1.000000e+00 : f32
    %17 = vector.broadcast %cst_10 : f32 to vector<256x256xf32>
    %18 = arith.addf %17, %16 : vector<256x256xf32>
    %19 = arith.divf %17, %18 : vector<256x256xf32>
    %20 = arith.mulf %14, %19 : vector<256x256xf32>
    %c0_11 = arith.constant 0 : index
    %c0_12 = arith.constant 0 : index
    %21 = vector.load %arg7[%c0_11, %c0_12] : memref<256x256xf32, #tpu.memory_space<vmem>>, vector<256x256xf32>
    tpu.vector_store %arg7[%c0_11, %c0_12], %20 {strides = array<i32>} : memref<256x256xf32, #tpu.memory_space<vmem>>, vector<256x256xf32>,
    return
  }
  func.func @transform_0(%arg0: i32, %arg1: i32) -> (i32, i32) {
    %c0_i32 = arith.constant 0 : i32
    %c0_i32_0 = arith.constant 0 : i32
    return %arg1, %c0_i32 : i32, i32
  }
  func.func @transform_1(%arg0: i32, %arg1: i32) -> (i32, i32) {
    %c0_i32 = arith.constant 0 : i32
    %c0_i32_0 = arith.constant 0 : i32
    return %c0_i32, %arg0 : i32, i32
  }
  func.func @transform_2(%arg0: i32, %arg1: i32) -> (i32, i32) {
    %c0_i32 = arith.constant 0 : i32
    %c0_i32_0 = arith.constant 0 : i32
    return %c0_i32, %arg0 : i32, i32
  }
  func.func @transform_3(%arg0: i32, %arg1: i32) -> (i32, i32) {
    %c0_i32 = arith.constant 0 : i32
    %c0_i32_0 = arith.constant 0 : i32
    return %c0_i32, %arg0 : i32, i32
  }
  func.func @transform_4(%arg0: i32, %arg1: i32) -> (i32, i32) {
    %c0_i32 = arith.constant 0 : i32
    %c0_i32_0 = arith.constant 0 : i32
    return %c0_i32, %arg0 : i32, i32
  }
  func.func @transform_5(%arg0: i32, %arg1: i32) -> (i32, i32) {
    %c0_i32 = arith.constant 0 : i32
    return %arg1, %arg0 : i32, i32
  }
}

</mosaic_0001>

<bundles_post_ra>
// kernel: gated_hyperbolic_tangent.1
= control target key start
LH: loop header
LB: loop body
LE: loop exit
PB: predicated region body
PF: predicated region fallthrough
CT: control target
= control target key end

     0   :  { %s4763_s0 = inlined_call_operand.hbm [shape: f32[256,384], index: 0, kind: input, shape index: {}]   ;;  %s4764_s1 = inlined_call_operand.hbm [shape: f32[384,512], index: 1, kind: input, shape index: {}]   ;;  %s4765_s2 = inlined_call_operand.hbm [shape: f32[384,512], index: 2, kind: input, shape index: {}]   ;;  %s4766_s3 = inlined_call_operand.vmem [shape: f32[1,512], index: 3, kind: input, shape index: {}]   ;;  %s4767_s4 = inlined_call_operand.vmem [shape: f32[1,512], index: 4, kind: input, shape index: {}]   ;;  %s4768_s5 = inlined_call_operand.hbm [shape: f32[256,512], index: 5, kind: output, shape index: {}]  }
   0x1   :  { %4783 = sst [smem:[#allocation47_spill]] %s4764_s1 }
   0x2   :  { %4784 = sst [smem:[#allocation48_spill]] %s4765_s2 }
   0x3   :  { %10 = vsyncpa [#allocation3], 0 }
   0x4   :  { %11 = vsyncpa [#allocation6], 0 }
   0x5   :  { %13 = vsyncpa [#allocation6 + $0x1], 0 }
   0x6   :  { %14 = vsyncpa [#allocation4], 0 }
   0x7   :  { %16 = vsyncpa [#allocation4 + $0x1], 0  ;;  %s3106_s18 = smov 0   ;;  %s3108_s19 = smov 0  }
   0x8   :  { %s3110_s20 = smov 0   ;;  %s3112_s21 = smov 0  }
   0x9   :  { %s3114_s22 = smov 0   ;;  %s3116_s23 = smov 0  }
   0xa LB: > { %s34_s24 = sadd.s32 1, %s3057_s22  ;;  %s67_s25 = sadd.s32 1, %s3049_s20  ;;  %s3061_s23 = sphi %s3116_s23, %s22_s23   ;;  %s3057_s22 = sphi %s3114_s22, %s4895_s22   ;;  %s3053_s21 = sphi %s3112_s21, %s4894_s21   ;;  %s3049_s20 = sphi %s3110_s20, %s4893_s20   ;;  %s3045_s19 = sphi %s3108_s19, %s4892_s19   ;;  %s3041_s18 = sphi %s3106_s18, %s4891_s18  }
   0xb   : > { %p36_p0 = scmp.ge.s32.totalorder %s34_s24, 2  ;;  %p74_p1 = scmp.ne.s32.totalorder %s3049_s20, %s3045_s19 }
   0xc   : > { %p75_p2 = scmp.eq.s32.totalorder %s3061_s23, 0  ;;  %p2450_p5 = scmp.lt.s32.totalorder %s3061_s23, 2 }
   0xd   : > { %s4897_s24 = smov (%p36_p0, %s34_s24), 0  ;;  %s227_s27 = sand.u32 1, %s3061_s23  }
   0xe   : > { %p76_p4 = por %p75_p2, %p74_p1  ;;  %s64_s26 = ssub.s32 %s3057_s22, %s4897_s24 }
   0xf   : > { %p65_p6 = scmp.eq.s32.totalorder %s64_s26, 0  ;;  %s229_s28 = sand.u32 1, %s3049_s20  }
  0x10   : > { %s2402_s29 = sshll.u32 %s3057_s22, 8  ;;  %s3156_s6 = smul.u32 768, %s229_s28 }
  0x11   : > { %s3154_s30 = scalar_select %p65_p6, %s3049_s20, %s67_s25  }
  0x12   : > { %s4785_s1 = sld [smem:[#allocation47_spill]]  ;;  %p3163_p7 = pnand %p2450_p5, %p76_p4 }
  0x13   : > { %s231_s11 = scalar_lea.vmem [#allocation5], %s3156_s6  ;;  %s3168_s13 = scalar_lea.sflag [#allocation6], %s227_s27 }
  0x14   : > { %s238_s12 = sshll.u32 %s231_s11, 4  ;;  %p4773_p8 = pneg %p3163_p7  ;;  %s239_s12 = int_to_ptr.vmem [resolvable:$true] %s238_s12 }
  0x15   : > { %s2908_s14 = scalar_lea.vmem %s239_s12, 12288  ;;  %s3063_s15 = smov [#allocation5]  }
  0x16   : > { %p2909_p9 = scmp.ne.s32.totalorder %s239_s12, %s2908_s14  ;;  %s2913_s16 = sshll.u32 %s3063_s15, 4  ;;  %s2914_s16 = int_to_ptr.vmem [resolvable:$false] %s2913_s16 }
  0x17   : > { %s2915_s17 = scalar_lea.vmem %s2914_s16, 24576  ;;  %p2916_p12 = scmp.lt.s32.totalorder %s239_s12, %s2914_s16 }
  0x18   : > { %s237_s9 = scalar_lea.hbm %s4785_s1, %s2402_s29  ;;  %p2911_p10 = pnand %p2909_p9, %p4773_p8 }
  0x19   : > { %p2917_p13 = scmp.lt.s32.totalorder %s2915_s17, %s2908_s14 }
  0x1a   : > { %p2912_p11 = pneg %p2911_p10 }
  0x1b   : > { %p2918_p0 = por %p2917_p13, %p2916_p12 }
  0x1d   : > { %p2919_p2 = pnand %p2918_p0, %p2912_p11 }
  0x1f   : > { %2922 = shalt.err (!%p2919_p2)
}
  0x20   : > { %s4769_s25 = smov 512   ;;  %s4770_s26 = smov 256  }
  0x21   : > { %s4771_s27 = smov 16   ;;  %s3182_s28 = sadd.s32 4294967295, %s3061_s23  }
  0x22   : > { %2441 = dma.hbm_to_vmem [thread:$0]  (!%p3163_p7), %s237_s9, 12288, %s239_s12, %s3168_s13, %s4769_s25, %s4770_s26, %s4771_s27  }
  0x23   : > { %s2320_s7 = sadd.s32 4294967294, %s3061_s23   ;;  %p80_p4 = scmp.ne.s32.totalorder %s3045_s19, %s3041_s18 }
  0x24   : > { %p4772_p5 = scmp.eq.s32.totalorder %s3182_s28, 0  ;;  %p184_p6 = scmp.eq.s32.totalorder %s3182_s28, 1 }
  0x25   : > { %p190_p9 = scmp.eq.s32.totalorder %s2320_s7, 1  ;;  %p2321_p10 = scmp.ge.s32.totalorder %s3061_s23, 1 }
  0x26   : > { %p3192_p11 = por %p4772_p5, %p80_p4  ;;  %p3199_p12 = por %p184_p6, %p74_p1 }
  0x27   : > { %p3203_p13 = por %p190_p9, %p80_p4  ;;  %p197_p0 = scmp.lt.s32.totalorder %s3061_s23, 3 }
  0x28   : > { %s3067_s14 = smov [#allocation2]   ;;  %s252_s17 = scalar_lea.vmem [#allocation7], %s3156_s6 }
  0x29   : > { %p3208_p2 = pnand %p2321_p10, %p197_p0  ;;  %s213_s15 = sshll.u32 %s3067_s14, 4  ;;  %s214_s15 = int_to_ptr.vmem [resolvable:$true] %s213_s15 }
  0x2a   : > { %s259_s7 = sshll.u32 %s252_s17, 4  ;;  %s4792_s2 = sld [smem:[#allocation48_spill]]  ;;  %s3228_s7 = int_to_ptr.vmem [resolvable:$true] %s259_s7 }
  0x2b   : > { %p2434_p3 = pneg %p3208_p2  ;;  %s2934_s14 = scalar_lea.vmem %s214_s15, 12288 }
  0x2c   : > { %p2935_p6 = scmp.ne.s32.totalorder %s214_s15, %s2934_s14  ;;  %p2942_p10 = scmp.lt.s32.totalorder %s214_s15, %s214_s15 }
  0x2d   : > { %p3216_p1 = pnand %p2434_p3, %p4772_p5  ;;  %p2943_p0 = scmp.lt.s32.totalorder %s2934_s14, %s2934_s14 }
  0x2f   : > { %p2925_p4 = pneg %p3216_p1  ;;  %p2944_p5 = por %p2943_p0, %p2942_p10 }
  0x30   : > { %s3226_s27 = scalar_lea.hbm %s4792_s2, %s2402_s29 }
  0x31   : > { %p2937_p9 = pnand %p2935_p6, %p2925_p4 }
  0x33   : > { %p2938_p3 = pneg %p2937_p9 }
  0x35   : > { %p2945_p8 = pnand %p2944_p5, %p2938_p3 }
  0x37   : > { %2948 = shalt.err (!%p2945_p8)
}
  0x38   : > { %s3068_s6 = smov 384   ;;  %s3069_s29 = smov 24  }
  0x39   : > { %2437 = dma.hbm_to_vmem [thread:$0]  (!%p3216_p1), %s4763_s0, 12288, %s214_s15, [#allocation3], %s3068_s6, %s3068_s6, %s3069_s29  }
  0x3a   : > { %s2962_s17 = scalar_lea.vmem %s3228_s7, 12288  ;;  %p4793_p6 = pneg %p3163_p7 }
  0x3b   : > { %p2963_p4 = scmp.ne.s32.totalorder %s3228_s7, %s2962_s17  ;;  %s3070_s14 = smov [#allocation7]  }
  0x3c   : > { %s2967_s1 = sshll.u32 %s3070_s14, 4  ;;  %s2968_s1 = int_to_ptr.vmem [resolvable:$false] %s2967_s1 }
  0x3d   : > { %p2965_p9 = pnand %p2963_p4, %p4793_p6  ;;  %s2969_s2 = scalar_lea.vmem %s2968_s1, 24576 }
  0x3e   : > { %p2970_p8 = scmp.lt.s32.totalorder %s3228_s7, %s2968_s1  ;;  %p2971_p5 = scmp.lt.s32.totalorder %s2969_s2, %s2962_s17 }
  0x3f   : > { %p2966_p10 = pneg %p2965_p9 }
  0x40   : > { %p2972_p3 = por %p2971_p5, %p2970_p8 }
  0x42   : > { %p2973_p0 = pnand %p2972_p3, %p2966_p10 }
  0x44   : > { %2976 = shalt.err (!%p2973_p0)
}
  0x45   : > { %s4794_s16 = smov 16   ;;  %s4795_s25 = smov 256  }
  0x46   : > { %s4796_s15 = smov 512   ;;  %287 = sbr.rel (%p3208_p2) target bundleno = 650 (0x28a), region = 40 }
  0x47   : > { %2444 = dma.hbm_to_vmem [thread:$0]  (!%p3163_p7), %s3226_s27, 12288, %s3228_s7, %s3168_s13, %s4796_s15, %s4795_s25, %s4794_s16  }
  0x4b   : > { %p4797_p1 = scmp.eq.s32.totalorder %s3182_s28, 0 }
  0x4d   : > { %3028 = dma.done.wait (%p4797_p1), [#allocation3], 12288   ;;  %p4798_p4 = pmov %p4797_p1 }
  0x4e   : > { %s293_s1 = sand.u32 1, %s3182_s28   ;;  %s3259_s2 = sand.u32 1, %s3045_s19  }
  0x4f   : > { %3030 = vsyncadd (%p4798_p4), [#allocation3], 4294955008  ;;  %s2423_s10 = smul.u32 768, %s3259_s2  ;;  %s294_s6 = scalar_lea.sflag [#allocation6], %s293_s1 }
  0x51   : > { %s3264_s13 = scalar_lea.vmem [#allocation5], %s2423_s10 }
  0x52   : > { %3032 = dma.done.wait (%p3192_p11), %s294_s6, 24576  }
  0x53   : > { %3034 = vsyncadd (%p3192_p11), %s294_s6, 4294942720  ;;  %v4776_v0 = vmov 0   ;;  %v535_v1 = vld [vmem:[%s3264_s13 + $0xe8] sm:$0xff]  ;;  %v537_v2 = vld [vmem:[%s3264_s13 + $0xf8] sm:$0xff]  ;;  %s3339_s27 = scalar_lea.vmem [#allocation7], %s2423_s10  ;;  %s2331_s28 = sshll.u32 %s3053_s21, 1 }
  0x54   : > { %887 = vmatprep.mubr.bf16.mxu1 %v4776_v0  ;;  %v599_v3 = vld [vmem:[%s3264_s13 + $0x2e8] sm:$0xff]  ;;  %v617_v4 = vpack.c.bf16 %v537_v2, %v535_v1  ;;  %v601_v5 = vld [vmem:[%s3264_s13 + $0x2f8] sm:$0xff]  ;;  %v534_v6 = vld [vmem:[%s3264_s13 + $0xe0] sm:$0xff]  ;;  %p350_p7 = scmp.lt.s32.totalorder %s2331_s28, 3  ;;  %s2330_s14 = sshll.u32 %s3259_s2, 9 }
  0x55   : > { %v536_v7 = vld [vmem:[%s3264_s13 + $0xf0] sm:$0xff]  ;;  %v649_v8 = vpack.c.bf16 %v601_v5, %v599_v3  ;;  %v598_v10 = vld [vmem:[%s3264_s13 + $0x2e0] sm:$0xff]  ;;  %v531_v12 = vld [vmem:[%s3264_s13 + $0xc8] sm:$0xff]  ;;  %s4431_s16 = scalar_lea.vmem [#allocation8], %s2330_s14  ;;  %s2404_s25 = sshll.u32 %s3053_s21, 8 }
  0x56   : > { %v616_v9 = vpack.c.bf16 %v536_v7, %v534_v6  ;;  %v600_v11 = vld [vmem:[%s3264_s13 + $0x2f0] sm:$0xff]  ;;  %662 = vmatprep.subr.bf16.mxu0 %v617_v4  ;;  %v533_v14 = vld [vmem:[%s3264_s13 + $0xd8] sm:$0xff]  ;;  %v595_v15 = vld [vmem:[%s3264_s13 + $0x2c8] sm:$0xff]  ;;  %s4899_s28 = smov (!%p350_p7, %s2331_s28), 3  ;;  %s2183_s15 = sshll.u32 %s4431_s16, 4  ;;  %s4713_s15 = int_to_ptr.vmem [resolvable:$true] %s2183_s15 }
  0x57   : > { %v648_v13 = vpack.c.bf16 %v600_v11, %v598_v10  ;;  %v597_v16 = vld [vmem:[%s3264_s13 + $0x2d8] sm:$0xff]  ;;  %855 = vmatprep.subr.bf16.mxu1 %v649_v8  ;;  %v615_v17 = vpack.c.bf16 %v533_v14, %v531_v12  ;;  %v530_v19 = vld [vmem:[%s3264_s13 + $0xc0] sm:$0xff]  ;;  %v532_v20 = vld [vmem:[%s3264_s13 + $0xd0] sm:$0xff]  ;;  %s352_s7 = scalar_lea.vmem %s4766_s3, %s4899_s28  ;;  %s357_s17 = scalar_lea.vmem %s4767_s4, %s4899_s28 }
  0x58   : > { %663 = vmatpush1.bf16.msra.mxu0 %v616_v9  ;;  %v647_v18 = vpack.c.bf16 %v597_v16, %v595_v15  ;;  %v594_v21 = vld [vmem:[%s3264_s13 + $0x2c0] sm:$0xff]  ;;  %v614_v22 = vpack.c.bf16 %v532_v20, %v530_v19  ;;  %v596_v23 = vld [vmem:[%s3264_s13 + $0x2d0] sm:$0xff]  ;;  %v527_v24 = vld [vmem:[%s3264_s13 + $0xa8] sm:$0xff]  ;;  %s4711_s6 = scalar_lea.hbm %s4768_s5, %s2404_s25  ;;  %s2167_s21 = scalar_lea.sflag [#allocation4], %s3259_s2 }
  0x59   : > { %856 = vmatpush1.bf16.msra.mxu1 %v648_v13  ;;  %v529_v25 = vld [vmem:[%s3264_s13 + $0xb8] sm:$0xff]  ;;  %664 = vmatprep.subr.bf16.mxu0 %v615_v17  ;;  %v646_v26 = vpack.c.bf16 %v596_v23, %v594_v21  ;;  %v591_v28 = vld [vmem:[%s3264_s13 + $0x2a8] sm:$0xff]  ;;  %v526_v30 = vld [vmem:[%s3264_s13 + $0xa0] sm:$0xff] }
  0x5a   : > { %857 = vmatprep.subr.bf16.mxu1 %v647_v18  ;;  %v613_v27 = vpack.c.bf16 %v529_v25, %v527_v24  ;;  %v593_v29 = vld [vmem:[%s3264_s13 + $0x2b8] sm:$0xff]  ;;  %v528_v32 = vld [vmem:[%s3264_s13 + $0xb0] sm:$0xff]  ;;  %v590_v33 = vld [vmem:[%s3264_s13 + $0x2a0] sm:$0xff] }
  0x5b   : > { %v645_v31 = vpack.c.bf16 %v593_v29, %v591_v28  ;;  %v592_v34 = vld [vmem:[%s3264_s13 + $0x2b0] sm:$0xff]  ;;  %v612_v35 = vpack.c.bf16 %v528_v32, %v526_v30  ;;  %v523_v36 = vld [vmem:[%s3264_s13 + $0x88] sm:$0xff]  ;;  %v525_v37 = vld [vmem:[%s3264_s13 + $0x98] sm:$0xff] }
  0x5c   : > { %665 = vmatpush1.bf16.msra.mxu0 %v614_v22  ;;  %v587_v38 = vld [vmem:[%s3264_s13 + $0x288] sm:$0xff]  ;;  %v644_v39 = vpack.c.bf16 %v592_v34, %v590_v33  ;;  %v611_v40 = vpack.c.bf16 %v525_v37, %v523_v36  ;;  %v589_v41 = vld [vmem:[%s3264_s13 + $0x298] sm:$0xff]  ;;  %v522_v42 = vld [vmem:[%s3264_s13 + $0x80] sm:$0xff] }
  0x5d   : > { %858 = vmatpush1.bf16.msra.mxu1 %v646_v26  ;;  %666 = vmatprep.subr.bf16.mxu0 %v613_v27  ;;  %v524_v43 = vld [vmem:[%s3264_s13 + $0x90] sm:$0xff]  ;;  %v643_v44 = vpack.c.bf16 %v589_v41, %v587_v38  ;;  %v586_v45 = vld [vmem:[%s3264_s13 + $0x280] sm:$0xff]  ;;  %v519_v47 = vld [vmem:[%s3264_s13 + $0x68] sm:$0xff] }
  0x5e   : > { %859 = vmatprep.subr.bf16.mxu1 %v645_v31  ;;  %v588_v46 = vld [vmem:[%s3264_s13 + $0x290] sm:$0xff]  ;;  %v521_v48 = vld [vmem:[%s3264_s13 + $0x78] sm:$0xff]  ;;  %v583_v49 = vld [vmem:[%s3264_s13 + $0x268] sm:$0xff]  ;;  %v610_v51 = vpack.c.bf16 %v524_v43, %v522_v42 }
  0x5f   : > { %v585_v50 = vld [vmem:[%s3264_s13 + $0x278] sm:$0xff]  ;;  %v642_v52 = vpack.c.bf16 %v588_v46, %v586_v45  ;;  %v609_v53 = vpack.c.bf16 %v521_v48, %v519_v47  ;;  %v518_v54 = vld [vmem:[%s3264_s13 + $0x60] sm:$0xff]  ;;  %v520_v55 = vld [vmem:[%s3264_s13 + $0x70] sm:$0xff] }
  0x60   : > { %667 = vmatpush1.bf16.msra.mxu0 %v612_v35  ;;  %v582_v56 = vld [vmem:[%s3264_s13 + $0x260] sm:$0xff]  ;;  %v641_v57 = vpack.c.bf16 %v585_v50, %v583_v49  ;;  %v584_v58 = vld [vmem:[%s3264_s13 + $0x270] sm:$0xff]  ;;  %v515_v59 = vld [vmem:[%s3264_s13 + $0x48] sm:$0xff]  ;;  %v608_v63 = vpack.c.bf16 %v520_v55, %v518_v54 }
  0x61   : > { %860 = vmatpush1.bf16.msra.mxu1 %v644_v39  ;;  %668 = vmatprep.subr.bf16.mxu0 %v611_v40  ;;  %v517_v60 = vld [vmem:[%s3264_s13 + $0x58] sm:$0xff]  ;;  %v579_v61 = vld [vmem:[%s3264_s13 + $0x248] sm:$0xff]  ;;  %v640_v1 = vpack.c.bf16 %v584_v58, %v582_v56  ;;  %v514_v3 = vld [vmem:[%s3264_s13 + $0x40] sm:$0xff] }
  0x62   : > { %861 = vmatprep.subr.bf16.mxu1 %v643_v44  ;;  %v581_v62 = vld [vmem:[%s3264_s13 + $0x258] sm:$0xff]  ;;  %v607_v2 = vpack.c.bf16 %v517_v60, %v515_v59  ;;  %v516_v4 = vld [vmem:[%s3264_s13 + $0x50] sm:$0xff]  ;;  %v578_v5 = vld [vmem:[%s3264_s13 + $0x240] sm:$0xff] }
  0x63   : > { %v639_v6 = vpack.c.bf16 %v581_v62, %v579_v61  ;;  %v580_v7 = vld [vmem:[%s3264_s13 + $0x250] sm:$0xff]  ;;  %v511_v8 = vld [vmem:[%s3264_s13 + $0x28] sm:$0xff]  ;;  %v513_v9 = vld [vmem:[%s3264_s13 + $0x38] sm:$0xff]  ;;  %v606_v12 = vpack.c.bf16 %v516_v4, %v514_v3 }
  0x64   : > { %669 = vmatpush1.bf16.msra.mxu0 %v610_v51  ;;  %v575_v10 = vld [vmem:[%s3264_s13 + $0x228] sm:$0xff]  ;;  %v577_v11 = vld [vmem:[%s3264_s13 + $0x238] sm:$0xff]  ;;  %v638_v13 = vpack.c.bf16 %v580_v7, %v578_v5  ;;  %v605_v14 = vpack.c.bf16 %v513_v9, %v511_v8  ;;  %v510_v15 = vld [vmem:[%s3264_s13 + $0x20] sm:$0xff] }
  0x65   : > { %862 = vmatpush1.bf16.msra.mxu1 %v642_v52  ;;  %670 = vmatprep.subr.bf16.mxu0 %v609_v53  ;;  %v512_v16 = vld [vmem:[%s3264_s13 + $0x30] sm:$0xff]  ;;  %v574_v17 = vld [vmem:[%s3264_s13 + $0x220] sm:$0xff]  ;;  %v637_v18 = vpack.c.bf16 %v577_v11, %v575_v10  ;;  %v507_v20 = vld [vmem:[%s3264_s13 + $0x8] sm:$0xff] }
  0x66   : > { %863 = vmatprep.subr.bf16.mxu1 %v641_v57  ;;  %v576_v19 = vld [vmem:[%s3264_s13 + $0x230] sm:$0xff]  ;;  %v509_v21 = vld [vmem:[%s3264_s13 + $0x18] sm:$0xff]  ;;  %v571_v22 = vld [vmem:[%s3264_s13 + $0x208] sm:$0xff]  ;;  %v604_v24 = vpack.c.bf16 %v512_v16, %v510_v15 }
  0x67   : > { %v573_v23 = vld [vmem:[%s3264_s13 + $0x218] sm:$0xff]  ;;  %v636_v25 = vpack.c.bf16 %v576_v19, %v574_v17  ;;  %v603_v26 = vpack.c.bf16 %v509_v21, %v507_v20  ;;  %v506_v27 = vld [vmem:[%s3264_s13] sm:$0xff]  ;;  %v508_v28 = vld [vmem:[%s3264_s13 + $0x10] sm:$0xff] }
  0x68   : > { %671 = vmatpush1.bf16.msra.mxu0 %v608_v63  ;;  %v570_v29 = vld [vmem:[%s3264_s13 + $0x200] sm:$0xff]  ;;  %v635_v30 = vpack.c.bf16 %v573_v23, %v571_v22  ;;  %v572_v31 = vld [vmem:[%s3264_s13 + $0x210] sm:$0xff]  ;;  %v567_v32 = vld [vmem:[%s3264_s13 + $0x1e8] sm:$0xff]  ;;  %v602_v36 = vpack.c.bf16 %v508_v28, %v506_v27 }
  0x69   : > { %864 = vmatpush1.bf16.msra.mxu1 %v640_v1  ;;  %672 = vmatprep.subr.bf16.mxu0 %v607_v2  ;;  %v569_v33 = vld [vmem:[%s3264_s13 + $0x1f8] sm:$0xff]  ;;  %v1077_v34 = vld [vmem:[%s3339_s27 + $0xe8] sm:$0xff]  ;;  %v364_v37 = vld [vmem:[#allocation2 + $0x10] sm:$0xff]  ;;  %v634_v39 = vpack.c.bf16 %v572_v31, %v570_v29 }
  0x6a   : > { %865 = vmatprep.subr.bf16.mxu1 %v639_v6  ;;  %v1079_v35 = vld [vmem:[%s3339_s27 + $0xf8] sm:$0xff]  ;;  %v367_v38 = vld [vmem:[#allocation2 + $0x28] sm:$0xff]  ;;  %v633_v40 = vpack.c.bf16 %v569_v33, %v567_v32  ;;  %v566_v41 = vld [vmem:[%s3264_s13 + $0x1e0] sm:$0xff] }
  0x6b   : > { %v568_v42 = vld [vmem:[%s3264_s13 + $0x1f0] sm:$0xff]  ;;  %v1076_v43 = vld [vmem:[%s3339_s27 + $0xe0] sm:$0xff]  ;;  %v1159_v44 = vpack.c.bf16 %v1079_v35, %v1077_v34  ;;  %v563_v46 = vld [vmem:[%s3264_s13 + $0x1c8] sm:$0xff]  ;;  %v3351_v50 = vpack.c.bf16 %v367_v38, %v364_v37 }
  0x6c   : > { %673 = vmatpush1.bf16.msra.mxu0 %v606_v12  ;;  %v1078_v45 = vld [vmem:[%s3339_s27 + $0xf0] sm:$0xff]  ;;  %v565_v47 = vld [vmem:[%s3264_s13 + $0x1d8] sm:$0xff]  ;;  %v1073_v48 = vld [vmem:[%s3339_s27 + $0xc8] sm:$0xff]  ;;  %v632_v51 = vpack.c.bf16 %v568_v42, %v566_v41 }
  0x6d   : > { %866 = vmatpush1.bf16.msra.mxu1 %v638_v13  ;;  %674 = vmatprep.subr.bf16.mxu0 %v605_v14  ;;  %v1075_v49 = vld [vmem:[%s3339_s27 + $0xd8] sm:$0xff]  ;;  %v1158_v52 = vpack.c.bf16 %v1078_v45, %v1076_v43  ;;  %v631_v53 = vpack.c.bf16 %v565_v47, %v563_v46  ;;  %v562_v54 = vld [vmem:[%s3264_s13 + $0x1c0] sm:$0xff]  ;;  %v564_v55 = vld [vmem:[%s3264_s13 + $0x1d0] sm:$0xff] }
  0x6e   : > { %867 = vmatprep.subr.bf16.mxu1 %v637_v18  ;;  %v559_v56 = vld [vmem:[%s3264_s13 + $0x1a8] sm:$0xff]  ;;  %v561_v57 = vld [vmem:[%s3264_s13 + $0x1b8] sm:$0xff]  ;;  %v1157_v58 = vpack.c.bf16 %v1075_v49, %v1073_v48  ;;  %v1072_v59 = vld [vmem:[%s3339_s27 + $0xc0] sm:$0xff]  ;;  %v630_v63 = vpack.c.bf16 %v564_v55, %v562_v54 }
  0x6f   : > { %v1074_v60 = vld [vmem:[%s3339_s27 + $0xd0] sm:$0xff]  ;;  %v1069_v61 = vld [vmem:[%s3339_s27 + $0xa8] sm:$0xff]  ;;  %v1071_v62 = vld [vmem:[%s3339_s27 + $0xb8] sm:$0xff]  ;;  %v629_v2 = vpack.c.bf16 %v561_v57, %v559_v56 }
  0x70   : > { %675 = vmatpush1.bf16.msra.mxu0 %v604_v24  ;;  %v370_v1 = vld [vmem:[#allocation2 + $0x40] sm:$0xff]  ;;  %v373_v3 = vld [vmem:[#allocation2 + $0x58] sm:$0xff]  ;;  %v560_v5 = vld [vmem:[%s3264_s13 + $0x1b0] sm:$0xff]  ;;  %v1156_v6 = vpack.c.bf16 %v1074_v60, %v1072_v59  ;;  %v1155_v9 = vpack.c.bf16 %v1071_v62, %v1069_v61 }
  0x71   : > { %868 = vmatpush1.bf16.msra.mxu1 %v636_v25  ;;  %676 = vmatprep.subr.bf16.mxu0 %v603_v26  ;;  %v558_v4 = vld [vmem:[%s3264_s13 + $0x1a0] sm:$0xff]  ;;  %v555_v7 = vld [vmem:[%s3264_s13 + $0x188] sm:$0xff]  ;;  %v557_v8 = vld [vmem:[%s3264_s13 + $0x198] sm:$0xff]  ;;  %v3370_v13 = vpack.c.bf16 %v373_v3, %v370_v1 }
  0x72   : > { %869 = vmatprep.subr.bf16.mxu1 %v635_v30  ;;  %v1068_v10 = vld [vmem:[%s3339_s27 + $0xa0] sm:$0xff]  ;;  %v1070_v11 = vld [vmem:[%s3339_s27 + $0xb0] sm:$0xff]  ;;  %v1065_v12 = vld [vmem:[%s3339_s27 + $0x88] sm:$0xff]  ;;  %v628_v14 = vpack.c.bf16 %v560_v5, %v558_v4  ;;  %v627_v18 = vpack.c.bf16 %v557_v8, %v555_v7 }
  0x73   : > { %v1067_v15 = vld [vmem:[%s3339_s27 + $0x98] sm:$0xff]  ;;  %v363_v16 = vld [vmem:[#allocation2 + $0x8] sm:$0xff]  ;;  %v366_v17 = vld [vmem:[#allocation2 + $0x20] sm:$0xff]  ;;  %v1154_v24 = vpack.c.bf16 %v1070_v11, %v1068_v10 }
  0x74   : > { %677 = vmatpush1.bf16.msra.mxu0 %v602_v36  ;;  %v554_v19 = vld [vmem:[%s3264_s13 + $0x180] sm:$0xff]  ;;  %v556_v20 = vld [vmem:[%s3264_s13 + $0x190] sm:$0xff]  ;;  %v3375_v21 = vpack.c.bf16 %v366_v17, %v363_v16  ;;  %v551_v22 = vld [vmem:[%s3264_s13 + $0x168] sm:$0xff]  ;;  %v1153_v25 = vpack.c.bf16 %v1067_v15, %v1065_v12 }
  0x75   : > { %870 = vmatpush1.bf16.msra.mxu1 %v634_v39  ;;  %678 = vmatprep.subr.bf16.mxu0 %v633_v40  ;;  %v553_v23 = vld [vmem:[%s3264_s13 + $0x178] sm:$0xff]  ;;  %v1064_v26 = vld [vmem:[%s3339_s27 + $0x80] sm:$0xff]  ;;  %v1066_v27 = vld [vmem:[%s3339_s27 + $0x90] sm:$0xff]  ;;  %v626_v28 = vpack.c.bf16 %v556_v20, %v554_v19 }
  0x76   : > { %1204 = vmatprep.subr.bf16.mxu1 %v1159_v44  ;;  %694 = vmatprep.mubr.bf16.mxu0 %v3375_v21  ;;  %v376_v29 = vld [vmem:[#allocation2 + $0x70] sm:$0xff]  ;;  %v1061_v30 = vld [vmem:[%s3339_s27 + $0x68] sm:$0xff]  ;;  %v1063_v31 = vld [vmem:[%s3339_s27 + $0x78] sm:$0xff]  ;;  %v625_v32 = vpack.c.bf16 %v553_v23, %v551_v22  ;;  %v1152_v38 = vpack.c.bf16 %v1066_v27, %v1064_v26 }
  0x77   : > { %v379_v33 = vld [vmem:[#allocation2 + $0x88] sm:$0xff]  ;;  %v550_v34 = vld [vmem:[%s3264_s13 + $0x160] sm:$0xff]  ;;  %v552_v35 = vld [vmem:[%s3264_s13 + $0x170] sm:$0xff]  ;;  %v1151_v39 = vpack.c.bf16 %v1063_v31, %v1061_v30 }
  0x78   : > { %888 = vmatmul.mubr.bf16.vlgmr.msra.gmra.mxu1 %v3351_v50  ;;  %679 = vmatpush2.bf16.msra.mxu0 %v632_v51  ;;  %v547_v36 = vld [vmem:[%s3264_s13 + $0x148] sm:$0xff]  ;;  %v549_v37 = vld [vmem:[%s3264_s13 + $0x158] sm:$0xff]  ;;  %v1060_v40 = vld [vmem:[%s3339_s27 + $0x60] sm:$0xff]  ;;  %v3392_v42 = vpack.c.bf16 %v379_v33, %v376_v29  ;;  %v624_v43 = vpack.c.bf16 %v552_v35, %v550_v34 }
  0x79   : > { %1205 = vmatpush1.bf16.msra.mxu1 %v1158_v52  ;;  %680 = vmatprep.subr.bf16.mxu0 %v631_v53  ;;  %v1062_v41 = vld [vmem:[%s3339_s27 + $0x70] sm:$0xff]  ;;  %v1057_v44 = vld [vmem:[%s3339_s27 + $0x48] sm:$0xff]  ;;  %v1059_v45 = vld [vmem:[%s3339_s27 + $0x58] sm:$0xff]  ;;  %v623_v46 = vpack.c.bf16 %v549_v37, %v547_v36 }
  0x7a   : > { %897 = vmatprep.mubr.bf16.mxu1 %v4776_v0  ;;  %1206 = vmatprep.subr.bf16.mxu1 %v1157_v58  ;;  %v546_v47 = vld [vmem:[%s3264_s13 + $0x140] sm:$0xff]  ;;  %v548_v48 = vld [vmem:[%s3264_s13 + $0x150] sm:$0xff]  ;;  %v543_v49 = vld [vmem:[%s3264_s13 + $0x128] sm:$0xff]  ;;  %v1150_v52 = vpack.c.bf16 %v1062_v41, %v1060_v40  ;;  %v1149_v53 = vpack.c.bf16 %v1059_v45, %v1057_v44 }
  0x7b   : > { %v545_v51 = vld [vmem:[%s3264_s13 + $0x138] sm:$0xff]  ;;  %v1056_v54 = vld [vmem:[%s3339_s27 + $0x40] sm:$0xff]  ;;  %v1058_v55 = vld [vmem:[%s3339_s27 + $0x50] sm:$0xff]  ;;  %v622_v56 = vpack.c.bf16 %v548_v48, %v546_v47 }
  0x7c   : > { %681 = vmatpush2.bf16.msra.mxu0 %v630_v63  ;;  %v382_v57 = vld [vmem:[#allocation2 + $0xa0] sm:$0xff]  ;;  %v1053_v58 = vld [vmem:[%s3339_s27 + $0x28] sm:$0xff]  ;;  %v1055_v59 = vld [vmem:[%s3339_s27 + $0x38] sm:$0xff]  ;;  %v621_v60 = vpack.c.bf16 %v545_v51, %v543_v49  ;;  %v1148_v3 = vpack.c.bf16 %v1058_v55, %v1056_v54 }
  0x7d   : > { %682 = vmatprep.subr.bf16.mxu0 %v629_v2  ;;  %1207 = vmatpush1.bf16.msra.mxu1 %v1156_v6  ;;  %v385_v61 = vld [vmem:[#allocation2 + $0xb8] sm:$0xff]  ;;  %v542_v62 = vld [vmem:[%s3264_s13 + $0x120] sm:$0xff]  ;;  %v544_v63 = vld [vmem:[%s3264_s13 + $0x130] sm:$0xff]  ;;  %v1147_v4 = vpack.c.bf16 %v1055_v59, %v1053_v58 }
  0x7e   : > { %1208 = vmatprep.subr.bf16.mxu1 %v1155_v9  ;;  %v539_v1 = vld [vmem:[%s3264_s13 + $0x108] sm:$0xff]  ;;  %v541_v2 = vld [vmem:[%s3264_s13 + $0x118] sm:$0xff]  ;;  %v1052_v5 = vld [vmem:[%s3339_s27 + $0x20] sm:$0xff]  ;;  %v3412_v7 = vpack.c.bf16 %v385_v61, %v382_v57  ;;  %v620_v8 = vpack.c.bf16 %v544_v63, %v542_v62 }
  0x7f   : > { %v1054_v6 = vld [vmem:[%s3339_s27 + $0x30] sm:$0xff]  ;;  %v1049_v9 = vld [vmem:[%s3339_s27 + $0x8] sm:$0xff]  ;;  %v1051_v10 = vld [vmem:[%s3339_s27 + $0x18] sm:$0xff]  ;;  %v619_v11 = vpack.c.bf16 %v541_v2, %v539_v1 }
  0x80   : > { %898 = vmatmul.mubr.bf16.gmra.mxu1 %v3370_v13  ;;  %683 = vmatpush2.bf16.msra.mxu0 %v628_v14  ;;  %v538_v12 = vld [vmem:[%s3264_s13 + $0x100] sm:$0xff]  ;;  %v540_v14 = vld [vmem:[%s3264_s13 + $0x110] sm:$0xff]  ;;  %v1141_v16 = vld [vmem:[%s3339_s27 + $0x2e8] sm:$0xff]  ;;  %v1145_v20 = vpack.c.bf16 %v1051_v10, %v1049_v9  ;;  %s2977_s13 = scalar_lea.vmem %s4713_s15, 8192 }
  0x81   : > { %684 = vmatprep.subr.bf16.mxu0 %v627_v18  ;;  %907 = vmatprep.mubr.bf16.mxu1 %v4776_v0  ;;  %v362_v15 = vld [vmem:[#allocation2] sm:$0xff]  ;;  %v1143_v17 = vld [vmem:[%s3339_s27 + $0x2f8] sm:$0xff]  ;;  %v1146_v18 = vpack.c.bf16 %v1054_v6, %v1052_v5  ;;  %v1050_v23 = vld [vmem:[%s3339_s27 + $0x10] sm:$0xff]  ;;  %p2978_p11 = scmp.ne.s32.totalorder %s4713_s15, %s2977_s13 }
  0x82   : > { %1209 = vmatpush1.bf16.msra.mxu1 %v1154_v24  ;;  %v365_v19 = vld [vmem:[#allocation2 + $0x18] sm:$0xff]  ;;  %v1048_v22 = vld [vmem:[%s3339_s27] sm:$0xff]  ;;  %v618_v24 = vpack.c.bf16 %v540_v14, %v538_v12  ;;  %v1109_v26 = vld [vmem:[%s3339_s27 + $0x1e8] sm:$0xff]  ;;  %v3426_v29 = vpack.c.bf16 %v1143_v17, %v1141_v16 }
  0x83   : > { %1210 = vmatprep.subr.bf16.mxu1 %v1153_v25  ;;  %v388_v25 = vld [vmem:[#allocation2 + $0xd0] sm:$0xff]  ;;  %v1111_v27 = vld [vmem:[%s3339_s27 + $0x1f8] sm:$0xff]  ;;  %v1140_v30 = vld [vmem:[%s3339_s27 + $0x2e0] sm:$0xff]  ;;  %v1144_v35 = vpack.c.bf16 %v1050_v23, %v1048_v22  ;;  %v3431_v36 = vpack.c.bf16 %v365_v19, %v362_v15  ;;  %p2979_p2 = pnand %p2978_p11, %p3199_p12 }
  0x84   : > { %685 = vmatpush2.bf16.msra.mxu0 %v626_v28  ;;  %v391_v28 = vld [vmem:[#allocation2 + $0xe8] sm:$0xff]  ;;  %v1142_v31 = vld [vmem:[%s3339_s27 + $0x2f0] sm:$0xff]  ;;  %v1139_v37 = vld [vmem:[%s3339_s27 + $0x2d8] sm:$0xff] }
  0x85   : > { %686 = vmatprep.subr.bf16.mxu0 %v625_v32  ;;  %v369_v32 = vld [vmem:[#allocation2 + $0x38] sm:$0xff]  ;;  %v372_v33 = vld [vmem:[#allocation2 + $0x50] sm:$0xff]  ;;  %v1137_v34 = vld [vmem:[%s3339_s27 + $0x2c8] sm:$0xff]  ;;  %v3436_v41 = vpack.c.bf16 %v391_v28, %v388_v25  ;;  %p2980_p6 = pneg %p2979_p2 }
  0x86   : > { %1211 = vmatpush1.bf16.msra.mxu1 %v1152_v38  ;;  %v1175_v38 = vpack.c.bf16 %v1111_v27, %v1109_v26  ;;  %v1110_v40 = vld [vmem:[%s3339_s27 + $0x1f0] sm:$0xff]  ;;  %v1105_v44 = vld [vmem:[%s3339_s27 + $0x1c8] sm:$0xff]  ;;  %v1107_v45 = vld [vmem:[%s3339_s27 + $0x1d8] sm:$0xff]  ;;  %v3447_v51 = vpack.c.bf16 %v1139_v37, %v1137_v34 }
  0x87   : > { %1212 = vmatprep.subr.bf16.mxu1 %v1151_v39  ;;  %v1108_v39 = vld [vmem:[%s3339_s27 + $0x1e0] sm:$0xff]  ;;  %v1138_v48 = vld [vmem:[%s3339_s27 + $0x2d0] sm:$0xff]  ;;  %v371_v55 = vld [vmem:[#allocation2 + $0x48] sm:$0xff] }
  0x88   : > { %908 = vmatmul.mubr.bf16.gmra.mxu1 %v3392_v42  ;;  %687 = vmatpush2.bf16.msra.mxu0 %v624_v43  ;;  %v3438_v43 = vpack.c.bf16 %v1142_v31, %v1140_v30  ;;  %v1136_v47 = vld [vmem:[%s3339_s27 + $0x2c0] sm:$0xff]  ;;  %v368_v49 = vld [vmem:[#allocation2 + $0x30] sm:$0xff]  ;;  %v1174_v54 = vpack.c.bf16 %v1110_v40, %v1108_v39  ;;  %v1101_v61 = vld [vmem:[%s3339_s27 + $0x1a8] sm:$0xff] }
  0x89   : > { %688 = vmatprep.subr.bf16.mxu0 %v623_v46  ;;  %917 = vmatprep.mubr.bf16.mxu1 %v4776_v0  ;;  %v3443_v46 = vpack.c.bf16 %v372_v33, %v369_v32  ;;  %v1104_v57 = vld [vmem:[%s3339_s27 + $0x1c0] sm:$0xff]  ;;  %v1106_v58 = vld [vmem:[%s3339_s27 + $0x1d0] sm:$0xff]  ;;  %v1103_v62 = vld [vmem:[%s3339_s27 + $0x1b8] sm:$0xff]  ;;  %v3468_v9 = vpack.c.bf16 %v371_v55, %v368_v49 }
  0x8a   : > { %1213 = vmatpush1.bf16.msra.mxu1 %v1150_v52  ;;  %v1133_v52 = vld [vmem:[%s3339_s27 + $0x2a8] sm:$0xff]  ;;  %v394_v59 = vld [vmem:[#allocation2 + $0x100] sm:$0xff]  ;;  %v397_v63 = vld [vmem:[#allocation2 + $0x118] sm:$0xff]  ;;  %v1172_v6 = vpack.c.bf16 %v1106_v58, %v1104_v57  ;;  %v1171_v10 = vpack.c.bf16 %v1103_v62, %v1101_v61 }
  0x8b   : > { %1214 = vmatprep.subr.bf16.mxu1 %v1149_v53  ;;  %v1135_v53 = vld [vmem:[%s3339_s27 + $0x2b8] sm:$0xff]  ;;  %v375_v1 = vld [vmem:[#allocation2 + $0x68] sm:$0xff]  ;;  %v378_v2 = vld [vmem:[#allocation2 + $0x80] sm:$0xff]  ;;  %v3473_v15 = vpack.c.bf16 %v397_v63, %v394_v59 }
  0x8c   : > { %689 = vmatpush2.bf16.msra.mxu0 %v622_v56  ;;  %v1173_v56 = vpack.c.bf16 %v1107_v45, %v1105_v44  ;;  %v1134_v5 = vld [vmem:[%s3339_s27 + $0x2b0] sm:$0xff]  ;;  %v1100_v12 = vld [vmem:[%s3339_s27 + $0x1a0] sm:$0xff]  ;;  %v3475_v16 = vpack.c.bf16 %v378_v2, %v375_v1  ;;  %v1097_v17 = vld [vmem:[%s3339_s27 + $0x188] sm:$0xff] }
  0x8d   : > { %690 = vmatprep.subr.bf16.mxu0 %v621_v60  ;;  %v3456_v60 = vpack.c.bf16 %v1138_v48, %v1136_v47  ;;  %v1102_v14 = vld [vmem:[%s3339_s27 + $0x1b0] sm:$0xff]  ;;  %v377_v22 = vld [vmem:[#allocation2 + $0x78] sm:$0xff]  ;;  %v1128_v25 = vld [vmem:[%s3339_s27 + $0x280] sm:$0xff] }
  0x8e   : > { %1215 = vmatpush1.bf16.msra.mxu1 %v1148_v3  ;;  %v3462_v3 = vpack.c.bf16 %v1135_v53, %v1133_v52  ;;  %v1130_v26 = vld [vmem:[%s3339_s27 + $0x290] sm:$0xff]  ;;  %v1096_v27 = vld [vmem:[%s3339_s27 + $0x180] sm:$0xff]  ;;  %v1125_v31 = vld [vmem:[%s3339_s27 + $0x268] sm:$0xff] }
  0x8f   : > { %1216 = vmatprep.subr.bf16.mxu1 %v1147_v4  ;;  %v1132_v4 = vld [vmem:[%s3339_s27 + $0x2a0] sm:$0xff]  ;;  %v1098_v30 = vld [vmem:[%s3339_s27 + $0x190] sm:$0xff]  ;;  %v1127_v32 = vld [vmem:[%s3339_s27 + $0x278] sm:$0xff]  ;;  %v3498_v40 = vpack.c.bf16 %v1130_v26, %v1128_v25 }
  0x90   : > { %918 = vmatmul.mubr.bf16.gmra.mxu1 %v3412_v7  ;;  %691 = vmatpush2.bf16.msra.mxu0 %v620_v8  ;;  %v1129_v8 = vld [vmem:[%s3339_s27 + $0x288] sm:$0xff]  ;;  %v3481_v19 = vpack.c.bf16 %v1134_v5, %v1132_v4  ;;  %v400_v33 = vld [vmem:[#allocation2 + $0x130] sm:$0xff]  ;;  %v1168_v44 = vpack.c.bf16 %v1098_v30, %v1096_v27  ;;  %v3501_v45 = vpack.c.bf16 %v1127_v32, %v1125_v31  ;;  %v1124_v47 = vld [vmem:[%s3339_s27 + $0x260] sm:$0xff] }
  0x91   : > { %692 = vmatprep.subr.bf16.mxu0 %v619_v11  ;;  %927 = vmatprep.mubr.bf16.mxu1 %v4776_v0  ;;  %v1131_v11 = vld [vmem:[%s3339_s27 + $0x298] sm:$0xff]  ;;  %v1093_v34 = vld [vmem:[%s3339_s27 + $0x168] sm:$0xff]  ;;  %v384_v39 = vld [vmem:[#allocation2 + $0xb0] sm:$0xff] }
  0x92   : > { %1217 = vmatpush1.bf16.msra.mxu1 %v1146_v18  ;;  %v1099_v18 = vld [vmem:[%s3339_s27 + $0x198] sm:$0xff]  ;;  %v3483_v23 = vpack.c.bf16 %v1131_v11, %v1129_v8  ;;  %v403_v37 = vld [vmem:[#allocation2 + $0x148] sm:$0xff]  ;;  %v1126_v48 = vld [vmem:[%s3339_s27 + $0x270] sm:$0xff] }
  0x93   : > { %1218 = vmatprep.subr.bf16.mxu1 %v1145_v20  ;;  %v374_v20 = vld [vmem:[#allocation2 + $0x60] sm:$0xff]  ;;  %v1169_v28 = vpack.c.bf16 %v1099_v18, %v1097_v17  ;;  %v3509_v55 = vpack.c.bf16 %v403_v37, %v400_v33  ;;  %v1089_v57 = vld [vmem:[%s3339_s27 + $0x148] sm:$0xff]  ;;  %v1091_v58 = vld [vmem:[%s3339_s27 + $0x158] sm:$0xff]  ;;  %v3516_v59 = vpack.c.bf16 %v1126_v48, %v1124_v47 }
  0x94   : > { %693 = vmatpush2.bf16.msra.mxu0 %v618_v24  ;;  %v1170_v24 = vpack.c.bf16 %v1102_v14, %v1100_v12  ;;  %v3505_v49 = vpack.c.bf16 %v377_v22, %v374_v20  ;;  %v1092_v53 = vld [vmem:[%s3339_s27 + $0x160] sm:$0xff]  ;;  %v380_v61 = vld [vmem:[#allocation2 + $0x90] sm:$0xff]  ;;  %v383_v62 = vld [vmem:[#allocation2 + $0xa8] sm:$0xff]  ;;  %v1165_v5 = vpack.c.bf16 %v1091_v58, %v1089_v57 }
  0x95   : > { %1397 = vmatprep.subr.bf16.mxu0 %v3426_v29  ;;  %v1088_v1 = vld [vmem:[%s3339_s27 + $0x140] sm:$0xff]  ;;  %v1121_v2 = vld [vmem:[%s3339_s27 + $0x248] sm:$0xff]  ;;  %v1087_v11 = vld [vmem:[%s3339_s27 + $0x138] sm:$0xff]  ;;  %v3537_v26 = vpack.c.bf16 %v383_v62, %v380_v61 }
  0x96   : > { %1219 = vmatpush1.bf16.msra.mxu1 %v1144_v35  ;;  %v1095_v35 = vld [vmem:[%s3339_s27 + $0x178] sm:$0xff]  ;;  %v406_v4 = vld [vmem:[#allocation2 + $0x160] sm:$0xff]  ;;  %v1085_v8 = vld [vmem:[%s3339_s27 + $0x128] sm:$0xff] }
  0x97   : > { %695 = vmatmul.mubr.bf16.vlgmr.msra.gmra.mxu0 %v3431_v36  ;;  %1220 = vmatprep.subr.bf16.mxu1 %v1175_v38  ;;  %v381_v38 = vld [vmem:[#allocation2 + $0x98] sm:$0xff]  ;;  %v1167_v52 = vpack.c.bf16 %v1095_v35, %v1093_v34  ;;  %v1120_v14 = vld [vmem:[%s3339_s27 + $0x240] sm:$0xff]  ;;  %v1122_v17 = vld [vmem:[%s3339_s27 + $0x250] sm:$0xff]  ;;  %v1163_v27 = vpack.c.bf16 %v1087_v11, %v1085_v8 }
  0x98   : > { %928 = vmatmul.mubr.bf16.gmra.mxu1 %v3436_v41  ;;  %1398 = vmatpush1.bf16.msra.mxu0 %v3438_v43  ;;  %v409_v18 = vld [vmem:[#allocation2 + $0x178] sm:$0xff]  ;;  %v387_v20 = vld [vmem:[#allocation2 + $0xc8] sm:$0xff]  ;;  %v390_v22 = vld [vmem:[#allocation2 + $0xe0] sm:$0xff] }
  0x99   : > { %704 = vmatprep.mubr.bf16.mxu0 %v3443_v46  ;;  %937 = vmatprep.mubr.bf16.mxu1 %v4776_v0  ;;  %v1086_v30 = vld [vmem:[%s3339_s27 + $0x130] sm:$0xff]  ;;  %v3541_v31 = vpack.c.bf16 %v409_v18, %v406_v4  ;;  %v3543_v32 = vpack.c.bf16 %v390_v22, %v387_v20  ;;  %v1081_v33 = vld [vmem:[%s3339_s27 + $0x108] sm:$0xff]  ;;  %v1083_v34 = vld [vmem:[%s3339_s27 + $0x118] sm:$0xff] }
  0x9a   : > { %1399 = vmatprep.subr.bf16.mxu0 %v3447_v51  ;;  %1221 = vmatpush2.bf16.msra.mxu1 %v1174_v54  ;;  %v1094_v54 = vld [vmem:[%s3339_s27 + $0x170] sm:$0xff]  ;;  %v1117_v35 = vld [vmem:[%s3339_s27 + $0x228] sm:$0xff]  ;;  %v1119_v37 = vld [vmem:[%s3339_s27 + $0x238] sm:$0xff] }
  0x9b   : > { %1222 = vmatprep.subr.bf16.mxu1 %v1173_v56  ;;  %v3511_v56 = vpack.c.bf16 %v384_v39, %v381_v38  ;;  %v1166_v63 = vpack.c.bf16 %v1094_v54, %v1092_v53  ;;  %v386_v38 = vld [vmem:[#allocation2 + $0xc0] sm:$0xff]  ;;  %v1118_v48 = vld [vmem:[%s3339_s27 + $0x230] sm:$0xff]  ;;  %v1161_v53 = vpack.c.bf16 %v1083_v34, %v1081_v33  ;;  %v415_v62 = vld [vmem:[#allocation2 + $0x1a8] sm:$0xff] }
  0x9c   : > { %1400 = vmatpush1.bf16.msra.mxu0 %v3456_v60  ;;  %v1116_v47 = vld [vmem:[%s3339_s27 + $0x220] sm:$0xff]  ;;  %v1082_v57 = vld [vmem:[%s3339_s27 + $0x110] sm:$0xff]  ;;  %v1115_v4 = vld [vmem:[%s3339_s27 + $0x218] sm:$0xff] }
  0x9d   : > { %1401 = vmatprep.subr.bf16.mxu0 %v3462_v3  ;;  %v1080_v54 = vld [vmem:[%s3339_s27 + $0x100] sm:$0xff]  ;;  %v3557_v58 = vpack.c.bf16 %v1118_v48, %v1116_v47  ;;  %v412_v61 = vld [vmem:[#allocation2 + $0x190] sm:$0xff]  ;;  %v395_v22 = vld [vmem:[#allocation2 + $0x108] sm:$0xff] }
  0x9e   : > { %1223 = vmatpush2.bf16.msra.mxu1 %v1172_v6  ;;  %v1090_v6 = vld [vmem:[%s3339_s27 + $0x150] sm:$0xff]  ;;  %v1112_v8 = vld [vmem:[%s3339_s27 + $0x200] sm:$0xff]  ;;  %v405_v47 = vld [vmem:[#allocation2 + $0x158] sm:$0xff] }
  0x9f   : > { %705 = vmatmul.mubr.bf16.gmra.mxu0 %v3468_v9  ;;  %1224 = vmatprep.subr.bf16.mxu1 %v1171_v10  ;;  %v1123_v10 = vld [vmem:[%s3339_s27 + $0x258] sm:$0xff]  ;;  %v1164_v25 = vpack.c.bf16 %v1090_v6, %v1088_v1  ;;  %v396_v1 = vld [vmem:[#allocation2 + $0x110] sm:$0xff] }
  0xa0   : > { %938 = vmatmul.mubr.bf16.gmra.mxu1 %v3473_v15  ;;  %714 = vmatprep.mubr.bf16.mxu0 %v3475_v16  ;;  %v3528_v12 = vpack.c.bf16 %v1123_v10, %v1121_v2  ;;  %v1113_v2 = vld [vmem:[%s3339_s27 + $0x208] sm:$0xff]  ;;  %v1114_v10 = vld [vmem:[%s3339_s27 + $0x210] sm:$0xff] }
  0xa1   : > { %947 = vmatprep.mubr.bf16.mxu1 %v4776_v0  ;;  %1402 = vmatpush1.bf16.msra.mxu0 %v3481_v19  ;;  %v3566_v6 = vpack.c.bf16 %v1115_v4, %v1113_v2  ;;  %v392_v20 = vld [vmem:[#allocation2 + $0xf0] sm:$0xff]  ;;  %v414_v2 = vld [vmem:[#allocation2 + $0x1a0] sm:$0xff] }
  0xa2   : > { %1403 = vmatprep.subr.bf16.mxu0 %v3483_v23  ;;  %1225 = vmatpush2.bf16.msra.mxu1 %v1170_v24  ;;  %v3534_v24 = vpack.c.bf16 %v1122_v17, %v1120_v14  ;;  %v3572_v14 = vpack.c.bf16 %v1114_v10, %v1112_v8  ;;  %v3574_v17 = vpack.c.bf16 %v415_v62, %v412_v61  ;;  %v408_v48 = vld [vmem:[#allocation2 + $0x170] sm:$0xff]  ;;  %v407_v61 = vld [vmem:[#allocation2 + $0x168] sm:$0xff]  ;;  %v430_v62 = vld [vmem:[#allocation2 + $0x220] sm:$0xff] }
  0xa3   : > { %1226 = vmatprep.subr.bf16.mxu1 %v1169_v28  ;;  %v1084_v28 = vld [vmem:[%s3339_s27 + $0x120] sm:$0xff]  ;;  %v3585_v33 = vpack.c.bf16 %v395_v22, %v392_v20  ;;  %v413_v20 = vld [vmem:[#allocation2 + $0x198] sm:$0xff]  ;;  %v436_v22 = vld [vmem:[#allocation2 + $0x250] sm:$0xff]  ;;  %s3072_s27 = smov [#allocation8]  }
  0xa4   : > { %v1162_v39 = vpack.c.bf16 %v1086_v30, %v1084_v28  ;;  %v399_v28 = vld [vmem:[#allocation2 + $0x128] sm:$0xff]  ;;  %v402_v30 = vld [vmem:[#allocation2 + $0x140] sm:$0xff]  ;;  %s2981_s28 = sshll.u32 %s3072_s27, 4  ;;  %s2982_s28 = int_to_ptr.vmem [resolvable:$false] %s2981_s28 }
  0xa5   : > { %1404 = vmatpush1.bf16.msra.mxu0 %v3498_v40  ;;  %v410_v10 = vld [vmem:[#allocation2 + $0x180] sm:$0xff]  ;;  %s2983_s8 = scalar_lea.vmem %s2982_s28, 16384  ;;  %p2984_p9 = scmp.lt.s32.totalorder %s4713_s15, %s2982_s28 }
  0xa6   : > { %1227 = vmatpush2.bf16.msra.mxu1 %v1168_v44  ;;  %1405 = vmatprep.subr.bf16.mxu0 %v3501_v45  ;;  %v3550_v44 = vpack.c.bf16 %v1119_v37, %v1117_v35  ;;  %v3589_v35 = vpack.c.bf16 %v402_v30, %v399_v28  ;;  %v401_v37 = vld [vmem:[#allocation2 + $0x138] sm:$0xff]  ;;  %v420_v28 = vld [vmem:[#allocation2 + $0x1d0] sm:$0xff]  ;;  %v3615_v30 = vpack.c.bf16 %v413_v20, %v410_v10  ;;  %p2985_p10 = scmp.lt.s32.totalorder %s2983_s8, %s2977_s13 }
  0xa7   : > { %715 = vmatmul.mubr.bf16.gmra.mxu0 %v3505_v49  ;;  %1228 = vmatprep.subr.bf16.mxu1 %v1167_v52  ;;  %v389_v52 = vld [vmem:[#allocation2 + $0xd8] sm:$0xff]  ;;  %v448_v20 = vld [vmem:[#allocation2 + $0x2b0] sm:$0xff] }
  0xa8   : > { %948 = vmatmul.mubr.bf16.gmra.mxu1 %v3509_v55  ;;  %724 = vmatprep.mubr.bf16.mxu0 %v3511_v56  ;;  %v3570_v11 = vpack.c.bf16 %v389_v52, %v386_v38  ;;  %v424_v38 = vld [vmem:[#allocation2 + $0x1f0] sm:$0xff]  ;;  %v425_v10 = vld [vmem:[#allocation2 + $0x1f8] sm:$0xff]  ;;  %p2986_p8 = por %p2985_p10, %p2984_p9 }
  0xa9   : > { %957 = vmatprep.mubr.bf16.mxu1 %v4776_v0  ;;  %1406 = vmatpush1.bf16.msra.mxu0 %v3516_v59 }
  0xaa   : > { %1229 = vmatpush2.bf16.msra.mxu1 %v1166_v63  ;;  %1407 = vmatprep.subr.bf16.mxu0 %v3528_v12  ;;  %v393_v63 = vld [vmem:[#allocation2 + $0xf8] sm:$0xff]  ;;  %p2987_p5 = pnand %p2986_p8, %p2980_p6 }
  0xab   : > { %1230 = vmatprep.subr.bf16.mxu1 %v1165_v5  ;;  %v1160_v5 = vpack.c.bf16 %v1082_v57, %v1080_v54  ;;  %v3576_v18 = vpack.c.bf16 %v396_v1, %v393_v63  ;;  %v3599_v54 = vpack.c.bf16 %v408_v48, %v405_v47  ;;  %v404_v57 = vld [vmem:[#allocation2 + $0x150] sm:$0xff]  ;;  %v433_v63 = vld [vmem:[#allocation2 + $0x238] sm:$0xff]  ;;  %v411_v1 = vld [vmem:[#allocation2 + $0x188] sm:$0xff] }
  0xac   : > { %v3605_v4 = vpack.c.bf16 %v407_v61, %v404_v57  ;;  %v3609_v8 = vpack.c.bf16 %v414_v2, %v411_v1  ;;  %v442_v47 = vld [vmem:[#allocation2 + $0x280] sm:$0xff]  ;;  %v445_v48 = vld [vmem:[#allocation2 + $0x298] sm:$0xff]  ;;  %v423_v57 = vld [vmem:[#allocation2 + $0x1e8] sm:$0xff] }
  0xad   : > { %1408 = vmatpush1.bf16.msra.mxu0 %v3534_v24  ;;  %v426_v61 = vld [vmem:[#allocation2 + $0x200] sm:$0xff] }
  0xae   : > { %1231 = vmatpush2.bf16.msra.mxu1 %v1164_v25  ;;  %1409 = vmatprep.subr.bf16.mxu0 %v3550_v44  ;;  %v418_v25 = vld [vmem:[#allocation2 + $0x1c0] sm:$0xff]  ;;  %v3629_v1 = vpack.c.bf16 %v426_v61, %v423_v57  ;;  %v457_v61 = vld [vmem:[#allocation2 + $0x2f8] sm:$0xff] }
  0xaf   : > { %725 = vmatmul.mubr.bf16.gmra.mxu0 %v3537_v26  ;;  %1232 = vmatprep.subr.bf16.mxu1 %v1163_v27  ;;  %v421_v27 = vld [vmem:[#allocation2 + $0x1d8] sm:$0xff]  ;;  %v422_v2 = vld [vmem:[#allocation2 + $0x1e0] sm:$0xff] }
  0xb0   : > { %958 = vmatmul.mubr.bf16.gmra.mxu1 %v3541_v31  ;;  %734 = vmatprep.mubr.bf16.mxu0 %v3543_v32  ;;  %v3587_v34 = vpack.c.bf16 %v421_v27, %v418_v25  ;;  %v439_v25 = vld [vmem:[#allocation2 + $0x268] sm:$0xff]  ;;  %v417_v27 = vld [vmem:[#allocation2 + $0x1b8] sm:$0xff]  ;;  %v454_v57 = vld [vmem:[#allocation2 + $0x2e0] sm:$0xff] }
  0xb1   : > { %967 = vmatprep.mubr.bf16.mxu1 %v4776_v0  ;;  %1410 = vmatpush1.bf16.msra.mxu0 %v3557_v58 }
  0xb2   : > { %1233 = vmatpush2.bf16.msra.mxu1 %v1162_v39  ;;  %1411 = vmatprep.subr.bf16.mxu0 %v3566_v6  ;;  %v427_v39 = vld [vmem:[#allocation2 + $0x208] sm:$0xff] }
  0xb3   : > { %1234 = vmatprep.subr.bf16.mxu1 %v1161_v53  ;;  %v3597_v53 = vpack.c.bf16 %v427_v39, %v424_v38  ;;  %v416_v38 = vld [vmem:[#allocation2 + $0x1b0] sm:$0xff]  ;;  %v419_v39 = vld [vmem:[#allocation2 + $0x1c8] sm:$0xff] }
  0xb5   : > { %1412 = vmatpush1.bf16.msra.mxu0 %v3572_v14 }
  0xb6   : > { %1235 = vmatpush2.bf16.msra.mxu1 %v1160_v5  ;;  %v3607_v5 = vpack.c.bf16 %v433_v63, %v430_v62  ;;  %v3625_v62 = vpack.c.bf16 %v419_v39, %v416_v38  ;;  %v3627_v63 = vpack.c.bf16 %v445_v48, %v442_v47  ;;  %v428_v47 = vld [vmem:[#allocation2 + $0x210] sm:$0xff]  ;;  %v431_v48 = vld [vmem:[#allocation2 + $0x228] sm:$0xff] }
  0xb7   : > { %735 = vmatmul.mubr.bf16.gmra.mxu0 %v3570_v11  ;;  %2405 = vmatprep.subr.bf16.mxu1 %v3426_v29  ;;  %v398_v29 = vld [vmem:[#allocation2 + $0x120] sm:$0xff] }
  0xb8   : > { %968 = vmatmul.mubr.bf16.gmra.mxu1 %v3574_v17  ;;  %744 = vmatprep.mubr.bf16.mxu0 %v3576_v18  ;;  %v3595_v52 = vpack.c.bf16 %v401_v37, %v398_v29  ;;  %v3617_v29 = vpack.c.bf16 %v439_v25, %v436_v22  ;;  %v3619_v37 = vpack.c.bf16 %v420_v28, %v417_v27  ;;  %v451_v22 = vld [vmem:[#allocation2 + $0x2c8] sm:$0xff]  ;;  %v429_v25 = vld [vmem:[#allocation2 + $0x218] sm:$0xff]  ;;  %v432_v27 = vld [vmem:[#allocation2 + $0x230] sm:$0xff] }
  0xb9   : > { %977 = vmatprep.mubr.bf16.mxu1 %v4776_v0  ;;  %4800 = vst [vmem:[#allocation13_spill] sm:$0xff] %v3627_v63  ;;  %v3635_v28 = vpack.c.bf16 %v425_v10, %v422_v2  ;;  %v3637_v38 = vpack.c.bf16 %v451_v22, %v448_v20  ;;  %v3639_v39 = vpack.c.bf16 %v432_v27, %v429_v25  ;;  %v434_v22 = vld [vmem:[#allocation2 + $0x240] sm:$0xff]  ;;  %v437_v25 = vld [vmem:[#allocation2 + $0x258] sm:$0xff] }
  0xba   : > { %4799 = vst [vmem:[#allocation12_spill] sm:$0xff] %v3617_v29  ;;  %v3645_v2 = vpack.c.bf16 %v431_v48, %v428_v47  ;;  %v3647_v10 = vpack.c.bf16 %v457_v61, %v454_v57  ;;  %v441_v27 = vld [vmem:[#allocation2 + $0x278] sm:$0xff]  ;;  %v447_v48 = vld [vmem:[#allocation2 + $0x2a8] sm:$0xff] }
  0xbb   : > { %4801 = vst [vmem:[#allocation14_spill] sm:$0xff] %v3637_v38 }
  0xbf   : > { %745 = vmatmul.mubr.bf16.gmra.mxu0 %v3585_v33 }
  0xc0   : > { %978 = vmatmul.mubr.bf16.gmra.mxu1 %v3587_v34  ;;  %754 = vmatprep.mubr.bf16.mxu0 %v3589_v35 }
  0xc1   : > { %987 = vmatprep.mubr.bf16.mxu1 %v4776_v0 }
  0xc7   : > { %755 = vmatmul.mubr.bf16.gmra.mxu0 %v3595_v52 }
  0xc8   : > { %988 = vmatmul.mubr.bf16.gmra.mxu1 %v3597_v53  ;;  %764 = vmatprep.mubr.bf16.mxu0 %v3599_v54 }
  0xc9   : > { %997 = vmatprep.mubr.bf16.mxu1 %v4776_v0 }
  0xcf   : > { %765 = vmatmul.mubr.bf16.gmra.mxu0 %v3605_v4 }
  0xd0   : > { %998 = vmatmul.mubr.bf16.gmra.mxu1 %v3607_v5  ;;  %774 = vmatprep.mubr.bf16.mxu0 %v3609_v8 }
  0xd1   : > { %1007 = vmatprep.mubr.bf16.mxu1 %v4776_v0 }
  0xd7   : > { %775 = vmatmul.mubr.bf16.gmra.mxu0 %v3615_v30 }
  0xd8   : > { %1008 = vmatmul.mubr.bf16.gmra.mxu1 %v3617_v29  ;;  %784 = vmatprep.mubr.bf16.mxu0 %v3619_v37  ;;  %v438_v29 = vld [vmem:[#allocation2 + $0x260] sm:$0xff] }
  0xd9   : > { %1017 = vmatprep.mubr.bf16.mxu1 %v4776_v0 }
  0xdf   : > { %785 = vmatmul.mubr.bf16.gmra.mxu0 %v3625_v62 }
  0xe0   : > { %1018 = vmatmul.mubr.bf16.gmra.mxu1 %v3627_v63  ;;  %794 = vmatprep.mubr.bf16.mxu0 %v3629_v1  ;;  %v435_v63 = vld [vmem:[#allocation2 + $0x248] sm:$0xff] }
  0xe1   : > { %1027 = vmatprep.mubr.bf16.mxu1 %v4776_v0  ;;  %v3649_v20 = vpack.c.bf16 %v438_v29, %v435_v63  ;;  %v440_v29 = vld [vmem:[#allocation2 + $0x270] sm:$0xff]  ;;  %v443_v63 = vld [vmem:[#allocation2 + $0x288] sm:$0xff] }
  0xe2   : > { %v3665_v57 = vpack.c.bf16 %v443_v63, %v440_v29 }
  0xe7   : > { %795 = vmatmul.mubr.bf16.gmra.mxu0 %v3635_v28 }
  0xe8   : > { %1028 = vmatmul.mubr.bf16.gmra.mxu1 %v3637_v38  ;;  %804 = vmatprep.mubr.bf16.mxu0 %v3639_v39  ;;  %v3655_v38 = vpack.c.bf16 %v437_v25, %v434_v22 }
  0xe9   : > { %1037 = vmatprep.mubr.bf16.mxu1 %v4776_v0  ;;  %v444_v0 = vld [vmem:[#allocation2 + $0x290] sm:$0xff] }
  0xea   : > { %v3657_v47 = vpack.c.bf16 %v444_v0, %v441_v27 }
  0xef   : > { %805 = vmatmul.mubr.bf16.gmra.mxu0 %v3645_v2 }
  0xf0   : > { %1038 = vmatmul.mubr.bf16.gmra.mxu1 %v3647_v10  ;;  %814 = vmatprep.mubr.bf16.mxu0 %v3649_v20 }
  0xf1   : > { %1236 = vmatprep.mubr.bf16.mxu1 %v3375_v21  ;;  %v450_v21 = vld [vmem:[#allocation2 + $0x2c0] sm:$0xff] }
  0xf2   : > { %v3667_v0 = vpack.c.bf16 %v450_v21, %v447_v48 }
  0xf7   : > { %815 = vmatmul.mubr.bf16.gmra.mxu0 %v3655_v38 }
  0xf8   : > { %1237 = vmatmul.mubr.bf16.vlgmr.msra.gmra.mxu1 %v3431_v36  ;;  %824 = vmatprep.mubr.bf16.mxu0 %v3657_v47  ;;  %v446_v36 = vld [vmem:[#allocation2 + $0x2a0] sm:$0xff] }
  0xf9   : > { %2413 = vmatpush1.bf16.msra.mxu1 %v3438_v43  ;;  %1246 = vmatprep.mubr.bf16.mxu1 %v3443_v46  ;;  %v449_v43 = vld [vmem:[#allocation2 + $0x2b8] sm:$0xff] }
  0xfa   : > { %2406 = vmatprep.subr.bf16.mxu1 %v3447_v51  ;;  %v453_v46 = vld [vmem:[#allocation2 + $0x2d8] sm:$0xff]  ;;  %v456_v51 = vld [vmem:[#allocation2 + $0x2f0] sm:$0xff]  ;;  %v3677_v61 = vpack.c.bf16 %v449_v43, %v446_v36 }
  0xfd   : > { %2414 = vmatpush1.bf16.msra.mxu1 %v3456_v60  ;;  %v3679_v60 = vpack.c.bf16 %v456_v51, %v453_v46 }
  0xfe   : > { %2407 = vmatprep.subr.bf16.mxu1 %v3462_v3  ;;  %v452_v3 = vld [vmem:[#allocation2 + $0x2d0] sm:$0xff] }
  0xff   : > { %825 = vmatmul.mubr.bf16.gmra.mxu0 %v3665_v57 }
 0x100   : > { %1247 = vmatmul.mubr.bf16.gmra.mxu1 %v3468_v9  ;;  %834 = vmatprep.mubr.bf16.mxu0 %v3667_v0  ;;  %v455_v9 = vld [vmem:[#allocation2 + $0x2e8] sm:$0xff] }
 0x101   : > { %1256 = vmatprep.mubr.bf16.mxu1 %v3475_v16  ;;  %2415 = vmatpush1.bf16.msra.mxu1 %v3481_v19  ;;  %v3689_v16 = vpack.c.bf16 %v455_v9, %v452_v3  ;;  %v4802_v19 = vmov 0  }
 0x102   : > { %2408 = vmatprep.subr.bf16.mxu1 %v3483_v23 }
 0x105   : > { %2416 = vmatpush1.bf16.msra.mxu1 %v3498_v40 }
 0x106   : > { %2409 = vmatprep.subr.bf16.mxu1 %v3501_v45 }
 0x107   : > { %835 = vmatmul.mubr.bf16.gmra.mxu0 %v3677_v61 }
 0x108   : > { %1257 = vmatmul.mubr.bf16.gmra.mxu1 %v3505_v49  ;;  %844 = vmatprep.mubr.bf16.mxu0 %v3679_v60 }
 0x109   : > { %1266 = vmatprep.mubr.bf16.mxu1 %v3511_v56  ;;  %2417 = vmatpush1.bf16.msra.mxu1 %v3516_v59 }
 0x10a   : > { %2410 = vmatprep.subr.bf16.mxu1 %v3528_v12 }
 0x10d   : > { %2418 = vmatpush1.bf16.msra.mxu1 %v3534_v24 }
 0x10e   : > { %2411 = vmatprep.subr.bf16.mxu1 %v3550_v44 }
 0x10f   : > { %845 = vmatmul.mubr.bf16.gmra.mxu0 %v3689_v16 }
 0x110   : > { %1267 = vmatmul.mubr.bf16.gmra.mxu1 %v3537_v26  ;;  %1429 = vmatprep.mubr.bf16.mxu0 %v4802_v19 }
 0x111   : > { %1276 = vmatprep.mubr.bf16.mxu1 %v3543_v32  ;;  %2419 = vmatpush1.bf16.msra.mxu1 %v3557_v58  ;;  %v650_v32 = vld [vmem:[%s352_s7] sm:$0x3] }
 0x112   : > { %2412 = vmatprep.subr.bf16.mxu1 %v3566_v6 }
 0x115   : > { %2420 = vmatpush1.bf16.msra.mxu1 %v3572_v14 }
 0x117   : > { %1430 = vmatmul.mubr.bf16.vlgmr.msra.gmra.mxu0 %v3351_v50 }
 0x118   : > { %1277 = vmatmul.mubr.bf16.gmra.mxu1 %v3570_v11  ;;  %1439 = vmatprep.mubr.bf16.mxu0 %v4802_v19 }
 0x119   : > { %1286 = vmatprep.mubr.bf16.mxu1 %v3576_v18 }
 0x11f   : > { %1440 = vmatmul.mubr.bf16.gmra.mxu0 %v3370_v13 }
 0x120   : > { %1287 = vmatmul.mubr.bf16.gmra.mxu1 %v3585_v33  ;;  %1449 = vmatprep.mubr.bf16.mxu0 %v4802_v19 }
 0x121   : > { %1296 = vmatprep.mubr.bf16.mxu1 %v3589_v35 }
 0x127   : > { %1450 = vmatmul.mubr.bf16.gmra.mxu0 %v3392_v42 }
 0x128   : > { %1297 = vmatmul.mubr.bf16.gmra.mxu1 %v3595_v52  ;;  %1459 = vmatprep.mubr.bf16.mxu0 %v4802_v19 }
 0x129   : > { %1306 = vmatprep.mubr.bf16.mxu1 %v3599_v54 }
 0x12f   : > { %1460 = vmatmul.mubr.bf16.gmra.mxu0 %v3412_v7 }
 0x130   : > { %1307 = vmatmul.mubr.bf16.gmra.mxu1 %v3605_v4  ;;  %1469 = vmatprep.mubr.bf16.mxu0 %v4802_v19 }
 0x131   : > { %1316 = vmatprep.mubr.bf16.mxu1 %v3609_v8 }
 0x137   : > { %1470 = vmatmul.mubr.bf16.gmra.mxu0 %v3436_v41 }
 0x138   : > { %v889_v50 = vpop.f32.mrf.mxu1  ;;  %1317 = vmatmul.mubr.bf16.gmra.mxu1 %v3615_v30  ;;  %1479 = vmatprep.mubr.bf16.mxu0 %v4802_v19 }
 0x139   : > { %1326 = vmatprep.mubr.bf16.mxu1 %v3619_v37 }
 0x13a   : > { %v891_v13 = vpop.f32.mrf.mxu1 }
 0x13c   : > { %v893_v42 = vpop.f32.mrf.mxu1 }
 0x13e   : > { %v895_v23 = vpop.f32.mrf.mxu1 }
 0x13f   : > { %1480 = vmatmul.mubr.bf16.gmra.mxu0 %v3473_v15  ;;  %v652_v15 = vlaneseq }
 0x140   : > { %v899_v7 = vpop.f32.mrf.mxu1  ;;  %1327 = vmatmul.mubr.bf16.gmra.mxu1 %v3625_v62  ;;  %1489 = vmatprep.mubr.bf16.mxu0 %v4802_v19 }
 0x141   : > { %1336 = vmatprep.mubr.bf16.mxu1 %v3629_v1  ;;  %v3741_v12 = vshrl.u32 %v652_v15, 7 }
 0x142   : > { %v901_v41 = vpop.f32.mrf.mxu1 }
 0x143   : > { %4803 = vst [vmem:[#allocation15_spill] sm:$0xff] %v3741_v12  ;;  %v4780_v26 = vsub.s32 0, %v3741_v12  ;;  %v4779_v58 = vsub.s32 1, %v3741_v12 }
 0x144   : > { %v3725_v40 = vpop.f32.mrf.mxu1 }
 0x145   : > { %v3769_v14 = vrot.slane %v650_v32, %v4779_v58 }
 0x146   : > { %v3727_v45 = vpop.f32.mrf.mxu1 }
 0x147   : > { %1490 = vmatmul.mubr.bf16.gmra.mxu0 %v3509_v55 }
 0x148   : > { %v3730_v49 = vpop.f32.mrf.mxu1  ;;  %1337 = vmatmul.mubr.bf16.gmra.mxu1 %v3635_v28  ;;  %1499 = vmatprep.mubr.bf16.mxu0 %v4802_v19 }
 0x149   : > { %1346 = vmatprep.mubr.bf16.mxu1 %v3639_v39 }
 0x14a   : > { %v3735_v56 = vpop.f32.mrf.mxu1 }
 0x14c   : > { %v3739_v59 = vpop.f32.mrf.mxu1 }
 0x14e   : > { %v3743_v24 = vpop.f32.mrf.mxu1 }
 0x14f   : > { %1500 = vmatmul.mubr.bf16.gmra.mxu0 %v3541_v31  ;;  %v3763_v31 = vrot.slane %v650_v32, %v4780_v26 }
 0x150   : > { %v3750_v55 = vpop.f32.mrf.mxu1  ;;  %1347 = vmatmul.mubr.bf16.gmra.mxu1 %v3645_v2  ;;  %1509 = vmatprep.mubr.bf16.mxu0 %v4802_v19 }
 0x151   : > { %1356 = vmatprep.mubr.bf16.mxu1 %v3649_v20 }
 0x152   : > { %v3756_v44 = vpop.f32.mrf.mxu1 }
 0x154   : > { %v3759_v6 = vpop.f32.mrf.mxu1 }
 0x156   : > { %v3765_v11 = vpop.f32.mrf.mxu1 }
 0x157   : > { %v696_v18 = vpop.f32.mrf.mxu0  ;;  %1510 = vmatmul.mubr.bf16.gmra.mxu0 %v3574_v17 }
 0x158   : > { %v697_v33 = vadd.f32 %v696_v18, %v3763_v31  ;;  %v3773_v35 = vpop.f32.mrf.mxu1  ;;  %1357 = vmatmul.mubr.bf16.gmra.mxu1 %v3655_v38  ;;  %1519 = vmatprep.mubr.bf16.mxu0 %v4802_v19 }
 0x159   : > { %v698_v52 = vpop.f32.mrf.mxu0  ;;  %1366 = vmatprep.mubr.bf16.mxu1 %v3657_v47 }
 0x15a   : > { %v3778_v54 = vadd.f32 %v889_v50, %v697_v33  ;;  %v699_v4 = vadd.f32 %v698_v52, %v3769_v14  ;;  %v3781_v8 = vpop.f32.mrf.mxu1 }
 0x15b   : > { %v700_v30 = vpop.f32.mrf.mxu0 }
 0x15c   : > { %v3783_v37 = vadd.f32 %v891_v13, %v699_v4  ;;  %v701_v17 = vadd.f32 %v700_v30, %v3763_v31  ;;  %v3786_v62 = vpop.f32.mrf.mxu1  ;;  %2511 = vtanh.f32 %v3778_v54 }
 0x15d   : > { %v702_v1 = vpop.f32.mrf.mxu0 }
 0x15e   : > { %v3788_v28 = vadd.f32 %v893_v42, %v701_v17  ;;  %v703_v38 = vadd.f32 %v702_v1, %v3769_v14  ;;  %v3791_v39 = vpop.f32.mrf.mxu1  ;;  %2513 = vtanh.f32 %v3783_v37 }
 0x15f   : > { %v706_v2 = vpop.f32.mrf.mxu0  ;;  %1520 = vmatmul.mubr.bf16.gmra.mxu0 %v3587_v34 }
 0x160   : > { %v3794_v20 = vadd.f32 %v895_v23, %v703_v38  ;;  %v707_v22 = vadd.f32 %v706_v2, %v3763_v31  ;;  %v3797_v25 = vpop.f32.mrf.mxu1  ;;  %1367 = vmatmul.mubr.bf16.gmra.mxu1 %v3665_v57  ;;  %1529 = vmatprep.mubr.bf16.mxu0 %v4802_v19  ;;  %2515 = vtanh.f32 %v3788_v28 }
 0x161   : > { %v708_v27 = vpop.f32.mrf.mxu0  ;;  %1376 = vmatprep.mubr.bf16.mxu1 %v3667_v0 }
 0x162   : > { %v3802_v47 = vadd.f32 %v899_v7, %v707_v22  ;;  %v709_v29 = vadd.f32 %v708_v27, %v3769_v14  ;;  %v3805_v63 = vpop.f32.mrf.mxu1  ;;  %v4804_v27 = vld [vmem:[#allocation12_spill] sm:$0xff]  ;;  %2517 = vtanh.f32 %v3794_v20 }
 0x163   : > { %v710_v34 = vpop.f32.mrf.mxu0 }
 0x164   : > { %v3807_v48 = vadd.f32 %v901_v41, %v709_v29  ;;  %v711_v21 = vadd.f32 %v710_v34, %v3763_v31  ;;  %v3810_v36 = vpop.f32.mrf.mxu1  ;;  %2519 = vtanh.f32 %v3802_v47 }
 0x165   : > { %v712_v43 = vpop.f32.mrf.mxu0 }
 0x166   : > { %v3813_v57 = vadd.f32 %v3725_v40, %v711_v21  ;;  %v713_v46 = vadd.f32 %v712_v43, %v3769_v14  ;;  %v3816_v0 = vpop.f32.mrf.mxu1  ;;  %v4805_v21 = vld [vmem:[#allocation14_spill] sm:$0xff]  ;;  %2521 = vtanh.f32 %v3807_v48 }
 0x167   : > { %v716_v51 = vpop.f32.mrf.mxu0  ;;  %1530 = vmatmul.mubr.bf16.gmra.mxu0 %v3597_v53 }
 0x168   : > { %v3820_v3 = vadd.f32 %v3727_v45, %v713_v46  ;;  %v717_v9 = vadd.f32 %v716_v51, %v3763_v31  ;;  %v3823_v50 = vpop.f32.mrf.mxu1  ;;  %1377 = vmatmul.mubr.bf16.gmra.mxu1 %v3677_v61  ;;  %1539 = vmatprep.mubr.bf16.mxu0 %v4802_v19  ;;  %2523 = vtanh.f32 %v3813_v57 }
 0x169   : > { %v718_v13 = vpop.f32.mrf.mxu0  ;;  %1386 = vmatprep.mubr.bf16.mxu1 %v3679_v60 }
 0x16a   : > { %v3829_v42 = vadd.f32 %v3730_v49, %v717_v9  ;;  %v719_v23 = vadd.f32 %v718_v13, %v3769_v14  ;;  %v3832_v53 = vpop.f32.mrf.mxu1  ;;  %2525 = vtanh.f32 %v3820_v3 }
 0x16b   : > { %v720_v7 = vpop.f32.mrf.mxu0 }
 0x16c   : > { %v3835_v41 = vadd.f32 %v3735_v56, %v719_v23  ;;  %v721_v40 = vadd.f32 %v720_v7, %v3763_v31  ;;  %v3838_v45 = vpop.f32.mrf.mxu1  ;;  %2527 = vtanh.f32 %v3829_v42 }
 0x16d   : > { %v722_v61 = vpop.f32.mrf.mxu0 }
 0x16e   : > { %v3841_v15 = vadd.f32 %v3739_v59, %v721_v40  ;;  %v723_v60 = vadd.f32 %v722_v61, %v3769_v14  ;;  %v3844_v49 = vpop.f32.mrf.mxu1  ;;  %2529 = vtanh.f32 %v3835_v41 }
 0x16f   : > { %v726_v32 = vpop.f32.mrf.mxu0  ;;  %1540 = vmatmul.mubr.bf16.gmra.mxu0 %v3607_v5 }
 0x170   : > { %v3848_v18 = vadd.f32 %v3743_v24, %v723_v60  ;;  %v727_v56 = vadd.f32 %v726_v32, %v3763_v31  ;;  %v3851_v33 = vpop.f32.mrf.mxu1  ;;  %1387 = vmatmul.mubr.bf16.gmra.mxu1 %v3689_v16  ;;  %1549 = vmatprep.mubr.bf16.mxu0 %v4802_v19  ;;  %v4806_v60 = vld [vmem:[#allocation13_spill] sm:$0xff]  ;;  %2531 = vtanh.f32 %v3841_v15  ;;  %v4091_v15 = vpop.eup %2511 }
 0x171   : > { %v728_v59 = vpop.f32.mrf.mxu0  ;;  %1569 = vmatprep.mubr.bf16.mxu1 %v4802_v19 }
 0x172   : > { %v3857_v52 = vadd.f32 %v3750_v55, %v727_v56  ;;  %v729_v4 = vadd.f32 %v728_v59, %v3769_v14  ;;  %v3860_v5 = vpop.f32.mrf.mxu1  ;;  %2533 = vtanh.f32 %v3848_v18 }
 0x173   : > { %v730_v24 = vpop.f32.mrf.mxu0 }
 0x174   : > { %v3863_v30 = vadd.f32 %v3756_v44, %v729_v4  ;;  %v731_v17 = vadd.f32 %v730_v24, %v3763_v31  ;;  %v3866_v1 = vpop.f32.mrf.mxu1  ;;  %2535 = vtanh.f32 %v3857_v52 }
 0x175   : > { %v732_v16 = vpop.f32.mrf.mxu0 }
 0x176   : > { %v3869_v38 = vadd.f32 %v3759_v6, %v731_v17  ;;  %v733_v2 = vadd.f32 %v732_v16, %v3769_v14  ;;  %v3872_v55 = vpop.f32.mrf.mxu1  ;;  %2537 = vtanh.f32 %v3863_v30 }
 0x177   : > { %v736_v22 = vpop.f32.mrf.mxu0  ;;  %1550 = vmatmul.mubr.bf16.gmra.mxu0 %v4804_v27 }
 0x178   : > { %v3876_v29 = vadd.f32 %v3765_v11, %v733_v2  ;;  %v737_v44 = vadd.f32 %v736_v22, %v3763_v31  ;;  %v3879_v34 = vpop.f32.mrf.mxu1  ;;  %1570 = vmatmul.mubr.bf16.vlgmr.msra.gmra.mxu1 %v4805_v21  ;;  %1559 = vmatprep.mubr.bf16.mxu0 %v4802_v19  ;;  %2539 = vtanh.f32 %v3869_v38 }
 0x179   : > { %v738_v6 = vpop.f32.mrf.mxu0  ;;  %1579 = vmatprep.mubr.bf16.mxu1 %v4802_v19 }
 0x17a   : > { %v3885_v43 = vadd.f32 %v3773_v35, %v737_v44  ;;  %v739_v46 = vadd.f32 %v738_v6, %v3769_v14  ;;  %v3888_v51 = vpop.f32.mrf.mxu1  ;;  %2541 = vtanh.f32 %v3876_v29 }
 0x17b   : > { %v740_v11 = vpop.f32.mrf.mxu0 }
 0x17c   : > { %v3891_v9 = vadd.f32 %v3781_v8, %v739_v46  ;;  %v741_v13 = vadd.f32 %v740_v11, %v3763_v31  ;;  %v3894_v23 = vpop.f32.mrf.mxu1  ;;  %2543 = vtanh.f32 %v3885_v43 }
 0x17d   : > { %v742_v7 = vpop.f32.mrf.mxu0 }
 0x17e   : > { %v3897_v40 = vadd.f32 %v3786_v62, %v741_v13  ;;  %v743_v19 = vadd.f32 %v742_v7, %v3769_v14  ;;  %v3900_v35 = vpop.f32.mrf.mxu1 }
 0x17f   : > { %v746_v61 = vpop.f32.mrf.mxu0  ;;  %1560 = vmatmul.mubr.bf16.gmra.mxu0 %v4806_v60 }
 0x180   : > { %v3904_v32 = vadd.f32 %v3791_v39, %v743_v19  ;;  %v747_v8 = vadd.f32 %v746_v61, %v3763_v31  ;;  %v3907_v56 = vpop.f32.mrf.mxu1  ;;  %1580 = vmatmul.mubr.bf16.gmra.mxu1 %v3647_v10 }
 0x181   : > { %v748_v59 = vpop.f32.mrf.mxu0 }
 0x182   : > { %v3911_v62 = vadd.f32 %v3797_v25, %v747_v8  ;;  %v749_v4 = vadd.f32 %v748_v59, %v3769_v14  ;;  %v3914_v24 = vpop.f32.mrf.mxu1 }
 0x183   : > { %v750_v17 = vpop.f32.mrf.mxu0 }
 0x184   : > { %v3917_v16 = vadd.f32 %v3805_v63, %v749_v4  ;;  %v751_v39 = vadd.f32 %v750_v17, %v3763_v31  ;;  %v3920_v2 = vpop.f32.mrf.mxu1 }
 0x185   : > { %v752_v22 = vpop.f32.mrf.mxu0 }
 0x186   : > { %v3923_v27 = vadd.f32 %v3810_v36, %v751_v39  ;;  %v753_v10 = vadd.f32 %v752_v22, %v3769_v14  ;;  %v3926_v25 = vpop.f32.mrf.mxu1 }
 0x187   : > { %v756_v44 = vpop.f32.mrf.mxu0 }
 0x188   : > { %v3929_v21 = vadd.f32 %v3816_v0, %v753_v10  ;;  %v757_v6 = vadd.f32 %v756_v44, %v3763_v31  ;;  %v3932_v63 = vpop.f32.mrf.mxu1 }
 0x189   : > { %v758_v46 = vpop.f32.mrf.mxu0 }
 0x18a   : > { %v3935_v11 = vadd.f32 %v3823_v50, %v757_v6  ;;  %v759_v13 = vadd.f32 %v758_v46, %v3769_v14  ;;  %v3938_v36 = vpop.f32.mrf.mxu1 }
 0x18b   : > { %v760_v7 = vpop.f32.mrf.mxu0 }
 0x18c   : > { %v3941_v19 = vadd.f32 %v3832_v53, %v759_v13  ;;  %v761_v61 = vadd.f32 %v760_v7, %v3763_v31  ;;  %v3944_v0 = vpop.f32.mrf.mxu1 }
 0x18d   : > { %v762_v60 = vpop.f32.mrf.mxu0 }
 0x18e   : > { %v3947_v8 = vadd.f32 %v3838_v45, %v761_v61  ;;  %v763_v59 = vadd.f32 %v762_v60, %v3769_v14  ;;  %v3950_v50 = vpop.f32.mrf.mxu1 }
 0x18f   : > { %v766_v4 = vpop.f32.mrf.mxu0 }
 0x190   : > { %v3953_v17 = vadd.f32 %v3844_v49, %v763_v59  ;;  %v767_v39 = vadd.f32 %v766_v4, %v3763_v31  ;;  %v3956_v53 = vpop.f32.mrf.mxu1 }
 0x191   : > { %v768_v22 = vpop.f32.mrf.mxu0 }
 0x192   : > { %v3959_v10 = vadd.f32 %v3851_v33, %v767_v39  ;;  %v769_v44 = vadd.f32 %v768_v22, %v3769_v14  ;;  %v3962_v45 = vpop.f32.mrf.mxu1 }
 0x193   : > { %v770_v6 = vpop.f32.mrf.mxu0 }
 0x194   : > { %v3965_v46 = vadd.f32 %v3860_v5, %v769_v44  ;;  %v771_v13 = vadd.f32 %v770_v6, %v3763_v31  ;;  %v3968_v49 = vpop.f32.mrf.mxu1 }
 0x195   : > { %v772_v7 = vpop.f32.mrf.mxu0 }
 0x196   : > { %v3971_v61 = vadd.f32 %v3866_v1, %v771_v13  ;;  %v773_v60 = vadd.f32 %v772_v7, %v3769_v14  ;;  %v3974_v33 = vpop.f32.mrf.mxu1 }
 0x197   : > { %v776_v59 = vpop.f32.mrf.mxu0 }
 0x198   : > { %v3977_v4 = vadd.f32 %v3872_v55, %v773_v60  ;;  %v777_v39 = vadd.f32 %v776_v59, %v3763_v31  ;;  %v3980_v5 = vpop.f32.mrf.mxu1 }
 0x199   : > { %v778_v22 = vpop.f32.mrf.mxu0 }
 0x19a   : > { %v3983_v44 = vadd.f32 %v3879_v34, %v777_v39  ;;  %v779_v6 = vadd.f32 %v778_v22, %v3769_v14  ;;  %v3986_v1 = vpop.f32.mrf.mxu1 }
 0x19b   : > { %v780_v13 = vpop.f32.mrf.mxu0 }
 0x19c   : > { %v3989_v7 = vadd.f32 %v3888_v51, %v779_v6  ;;  %v781_v58 = vadd.f32 %v780_v13, %v3763_v31  ;;  %v3992_v55 = vpop.f32.mrf.mxu1 }
 0x19d   : > { %v782_v60 = vpop.f32.mrf.mxu0 }
 0x19e   : > { %4807 = vst [vmem:[#allocation12_spill] sm:$0xff] %v3989_v7  ;;  %v3995_v59 = vadd.f32 %v3894_v23, %v781_v58  ;;  %v783_v26 = vadd.f32 %v782_v60, %v3769_v14  ;;  %v3998_v34 = vpop.f32.mrf.mxu1 }
 0x19f   : > { %v786_v39 = vpop.f32.mrf.mxu0 }
 0x1a0   : > { %4808 = vst [vmem:[#allocation14_spill] sm:$0xff] %v3995_v59  ;;  %v4001_v22 = vadd.f32 %v3900_v35, %v783_v26  ;;  %v787_v12 = vadd.f32 %v786_v39, %v3763_v31  ;;  %v4004_v51 = vpop.f32.mrf.mxu1 }
 0x1a1   : > { %v788_v6 = vpop.f32.mrf.mxu0 }
 0x1a2   : > { %4809 = vst [vmem:[#allocation13_spill] sm:$0xff] %v4001_v22  ;;  %v4007_v13 = vadd.f32 %v3907_v56, %v787_v12  ;;  %v789_v7 = vadd.f32 %v788_v6, %v3769_v14  ;;  %v4010_v58 = vpop.f32.mrf.mxu1 }
 0x1a3   : > { %v790_v23 = vpop.f32.mrf.mxu0 }
 0x1a4   : > { %4810 = vst [vmem:[#allocation16_spill] sm:$0xff] %v4007_v13  ;;  %v4013_v60 = vadd.f32 %v3914_v24, %v789_v7  ;;  %v791_v59 = vadd.f32 %v790_v23, %v3763_v31  ;;  %v4016_v26 = vpop.f32.mrf.mxu1 }
 0x1a5   : > { %v792_v35 = vpop.f32.mrf.mxu0 }
 0x1a6   : > { %4811 = vst [vmem:[#allocation17_spill] sm:$0xff] %v4013_v60  ;;  %v4019_v39 = vadd.f32 %v3920_v2, %v791_v59  ;;  %v793_v22 = vadd.f32 %v792_v35, %v3769_v14  ;;  %v4022_v12 = vpop.f32.mrf.mxu1 }
 0x1a7   : > { %v796_v56 = vpop.f32.mrf.mxu0 }
 0x1a8   : > { %v4025_v6 = vadd.f32 %v3926_v25, %v793_v22  ;;  %v797_v13 = vadd.f32 %v796_v56, %v3763_v31  ;;  %v4028_v24 = vpop.f32.mrf.mxu1 }
 0x1a9   : > { %v798_v7 = vpop.f32.mrf.mxu0 }
 0x1aa   : > { %v4031_v23 = vadd.f32 %v3932_v63, %v797_v13  ;;  %v799_v60 = vadd.f32 %v798_v7, %v3769_v14  ;;  %v4034_v2 = vpop.f32.mrf.mxu1 }
 0x1ab   : > { %v800_v59 = vpop.f32.mrf.mxu0 }
 0x1ac   : > { %v4038_v35 = vadd.f32 %v3938_v36, %v799_v60  ;;  %v801_v25 = vadd.f32 %v800_v59, %v3763_v31  ;;  %v4041_v22 = vpop.f32.mrf.mxu1 }
 0x1ad   : > { %v802_v56 = vpop.f32.mrf.mxu0 }
 0x1ae   : > { %v4046_v63 = vadd.f32 %v3944_v0, %v801_v25  ;;  %v803_v13 = vadd.f32 %v802_v56, %v3769_v14  ;;  %v4049_v7 = vpop.f32.mrf.mxu1 }
 0x1af   : > { %v806_v54 = vpop.f32.mrf.mxu0 }
 0x1b0   : > { %v4054_v36 = vadd.f32 %v3950_v50, %v803_v13  ;;  %v807_v37 = vadd.f32 %v806_v54, %v3763_v31  ;;  %v4057_v60 = vpop.f32.mrf.mxu1  ;;  %v4094_v54 = vpop.eup %2513  ;;  %2545 = vtanh.f32 %v3891_v9 }
 0x1b1   : > { %v808_v28 = vpop.f32.mrf.mxu0 }
 0x1b2   : > { %v4062_v0 = vadd.f32 %v3956_v53, %v807_v37  ;;  %v809_v20 = vadd.f32 %v808_v28, %v3769_v14  ;;  %v4065_v59 = vpop.f32.mrf.mxu1  ;;  %v4103_v37 = vpop.eup %2515  ;;  %2547 = vtanh.f32 %v3897_v40 }
 0x1b3   : > { %v810_v47 = vpop.f32.mrf.mxu0 }
 0x1b4   : > { %v4070_v50 = vadd.f32 %v3962_v45, %v809_v20  ;;  %v811_v48 = vadd.f32 %v810_v47, %v3763_v31  ;;  %v4073_v25 = vpop.f32.mrf.mxu1  ;;  %v4106_v20 = vpop.eup %2517  ;;  %2549 = vtanh.f32 %v3904_v32 }
 0x1b5   : > { %v812_v57 = vpop.f32.mrf.mxu0  ;;  %v4115_v47 = vpop.eup %2519  ;;  %2551 = vtanh.f32 %v3911_v62 }
 0x1b6   : > { %v4078_v53 = vadd.f32 %v3968_v49, %v811_v48  ;;  %v813_v3 = vadd.f32 %v812_v57, %v3769_v14  ;;  %v4081_v56 = vpop.f32.mrf.mxu1  ;;  %v4118_v57 = vpop.eup %2521  ;;  %2553 = vtanh.f32 %v3917_v16 }
 0x1b7   : > { %v816_v42 = vpop.f32.mrf.mxu0 }
 0x1b8   : > { %v4086_v45 = vadd.f32 %v3974_v33, %v813_v3  ;;  %v817_v41 = vadd.f32 %v816_v42, %v3763_v31  ;;  %v4089_v13 = vpop.f32.mrf.mxu1  ;;  %v4127_v3 = vpop.eup %2523  ;;  %2555 = vtanh.f32 %v3923_v27 }
 0x1b9   : > { %v818_v49 = vpop.f32.mrf.mxu0 }
 0x1ba   : > { %v4098_v18 = vadd.f32 %v3980_v5, %v817_v41  ;;  %v819_v52 = vadd.f32 %v818_v49, %v3769_v14  ;;  %v4101_v33 = vpop.f32.mrf.mxu1  ;;  %v4130_v41 = vpop.eup %2525  ;;  %2557 = vtanh.f32 %v3929_v21 }
 0x1bb   : > { %v820_v28 = vpop.f32.mrf.mxu0  ;;  %v4139_v49 = vpop.eup %2527  ;;  %2559 = vtanh.f32 %v3935_v11 }
 0x1bc   : > { %v4110_v30 = vadd.f32 %v3986_v1, %v819_v52  ;;  %v821_v38 = vadd.f32 %v820_v28, %v3763_v31  ;;  %v4113_v5 = vpop.f32.mrf.mxu1  ;;  %v4142_v28 = vpop.eup %2529  ;;  %2561 = vtanh.f32 %v3941_v19 }
 0x1bd   : > { %v822_v48 = vpop.f32.mrf.mxu0 }
 0x1be   : > { %v4122_v29 = vadd.f32 %v3992_v55, %v821_v38  ;;  %v823_v43 = vadd.f32 %v822_v48, %v3769_v14  ;;  %v4125_v1 = vpop.f32.mrf.mxu1  ;;  %v4151_v38 = vpop.eup %2531  ;;  %2563 = vtanh.f32 %v3947_v8 }
 0x1bf   : > { %v826_v42 = vpop.f32.mrf.mxu0 }
 0x1c0   : > { %v4134_v9 = vadd.f32 %v3998_v34, %v823_v43  ;;  %v827_v40 = vadd.f32 %v826_v42, %v3763_v31  ;;  %v4137_v55 = vpop.f32.mrf.mxu1  ;;  %v4154_v43 = vpop.eup %2533  ;;  %2565 = vtanh.f32 %v3953_v17 }
 0x1c1   : > { %v828_v52 = vpop.f32.mrf.mxu0  ;;  %v4163_v42 = vpop.eup %2535  ;;  %2567 = vtanh.f32 %v3959_v10 }
 0x1c2   : > { %v4146_v32 = vadd.f32 %v4004_v51, %v827_v40  ;;  %v829_v62 = vadd.f32 %v828_v52, %v3769_v14  ;;  %v4149_v34 = vpop.f32.mrf.mxu1  ;;  %v4166_v52 = vpop.eup %2537  ;;  %2569 = vtanh.f32 %v3965_v46 }
 0x1c3   : > { %v830_v48 = vpop.f32.mrf.mxu0 }
 0x1c4   : > { %4812 = vst [vmem:[#allocation18_spill] sm:$0xff] %v4146_v32  ;;  %v4158_v16 = vadd.f32 %v4010_v58, %v829_v62  ;;  %v831_v27 = vadd.f32 %v830_v48, %v3763_v31  ;;  %v4161_v51 = vpop.f32.mrf.mxu1  ;;  %v4175_v62 = vpop.eup %2539  ;;  %2571 = vtanh.f32 %v3971_v61 }
 0x1c5   : > { %v832_v40 = vpop.f32.mrf.mxu0  ;;  %4815 = vst [vmem:[#allocation21_spill] sm:$0xff] %v4175_v62 }
 0x1c6   : > { %4813 = vst [vmem:[#allocation19_spill] sm:$0xff] %v4158_v16  ;;  %v4170_v21 = vadd.f32 %v4016_v26, %v831_v27  ;;  %v833_v11 = vadd.f32 %v832_v40, %v3769_v14  ;;  %v4173_v58 = vpop.f32.mrf.mxu1  ;;  %v4178_v16 = vpop.eup %2541  ;;  %2573 = vtanh.f32 %v3977_v4 }
 0x1c7   : > { %v836_v48 = vpop.f32.mrf.mxu0  ;;  %4816 = vst [vmem:[#allocation22_spill] sm:$0xff] %v4178_v16  ;;  %v4187_v27 = vpop.eup %2543  ;;  %2575 = vtanh.f32 %v3983_v44 }
 0x1c8   : > { %4814 = vst [vmem:[#allocation20_spill] sm:$0xff] %v4170_v21  ;;  %v4182_v19 = vadd.f32 %v4022_v12, %v833_v11  ;;  %v837_v8 = vadd.f32 %v836_v48, %v3763_v31  ;;  %v4185_v26 = vpop.f32.mrf.mxu1  ;;  %4818 = vst [vmem:[#allocation24_spill] sm:$0xff] %v4187_v27  ;;  %v4190_v21 = vpop.eup %2545 }
 0x1c9   : > { %v838_v40 = vpop.f32.mrf.mxu0  ;;  %4819 = vst [vmem:[#allocation25_spill] sm:$0xff] %v4190_v21  ;;  %v4199_v11 = vpop.eup %2547  ;;  %v1192_v21 = vld [vmem:[%s357_s17] sm:$0x3] }
 0x1ca   : > { %4817 = vst [vmem:[#allocation23_spill] sm:$0xff] %v4182_v19  ;;  %v4194_v17 = vadd.f32 %v4028_v24, %v837_v8  ;;  %v839_v10 = vadd.f32 %v838_v40, %v3769_v14  ;;  %v4197_v12 = vpop.f32.mrf.mxu1  ;;  %4820 = vst [vmem:[#allocation26_spill] sm:$0xff] %v4199_v11  ;;  %v4202_v19 = vpop.eup %2549  ;;  %v4823_v40 = vld [vmem:[#allocation12_spill] sm:$0xff] }
 0x1cb   : > { %v840_v48 = vpop.f32.mrf.mxu0  ;;  %4821 = vst [vmem:[#allocation27_spill] sm:$0xff] %v4202_v19  ;;  %v4215_v8 = vpop.eup %2551  ;;  %2577 = vtanh.f32 %v4823_v40  ;;  %v4825_v19 = vld [vmem:[#allocation14_spill] sm:$0xff]  ;;  %v4829_v40 = vld [vmem:[#allocation16_spill] sm:$0xff] }
 0x1cc   : > { %v4210_v46 = vadd.f32 %v4034_v2, %v839_v10  ;;  %v841_v61 = vadd.f32 %v840_v48, %v3763_v31  ;;  %v4213_v24 = vpop.f32.mrf.mxu1  ;;  %4822 = vst [vmem:[#allocation28_spill] sm:$0xff] %v4215_v8  ;;  %v4218_v32 = vpop.eup %2553  ;;  %2579 = vtanh.f32 %v4825_v19  ;;  %v4827_v48 = vld [vmem:[#allocation13_spill] sm:$0xff] }
 0x1cd   : > { %v842_v4 = vpop.f32.mrf.mxu0  ;;  %4824 = vst [vmem:[#allocation12_spill] sm:$0xff] %v4218_v32  ;;  %v4227_v10 = vpop.eup %2555  ;;  %2581 = vtanh.f32 %v4827_v48  ;;  %v4832_v48 = vld [vmem:[#allocation15_spill] sm:$0xff] }
 0x1ce   : > { %v4222_v44 = vadd.f32 %v4041_v22, %v841_v61  ;;  %v843_v11 = vadd.f32 %v842_v4, %v3769_v14  ;;  %v4225_v2 = vpop.f32.mrf.mxu1  ;;  %4826 = vst [vmem:[#allocation14_spill] sm:$0xff] %v4227_v10  ;;  %v4230_v27 = vpop.eup %2557  ;;  %2583 = vtanh.f32 %v4829_v40  ;;  %v4831_v4 = vld [vmem:[#allocation17_spill] sm:$0xff] }
 0x1cf   : > { %v846_v8 = vpop.f32.mrf.mxu0  ;;  %4828 = vst [vmem:[#allocation13_spill] sm:$0xff] %v4230_v27  ;;  %v4239_v61 = vpop.eup %2559  ;;  %2585 = vtanh.f32 %v4831_v4  ;;  %v4833_v27 = vsub.s32 0, %v4832_v48 }
 0x1d0   : > { %v4234_v32 = vadd.f32 %v4049_v7, %v843_v11  ;;  %v847_v22 = vadd.f32 %v846_v8, %v3763_v31  ;;  %v4237_v19 = vpop.f32.mrf.mxu1  ;;  %4830 = vst [vmem:[#allocation16_spill] sm:$0xff] %v4239_v61  ;;  %v4242_v16 = vpop.eup %2561  ;;  %2587 = vtanh.f32 %v4019_v39  ;;  %v4836_v39 = vsub.s32 1, %v4832_v48 }
 0x1d1   : > { %v848_v10 = vpop.f32.mrf.mxu0  ;;  %v4247_v62 = vrot.slane %v1192_v21, %v4833_v27  ;;  %v4255_v40 = vpop.eup %2563  ;;  %2589 = vtanh.f32 %v4025_v6 }
 0x1d2   : > { %v4250_v7 = vadd.f32 %v4057_v60, %v847_v22  ;;  %v849_v11 = vadd.f32 %v848_v10, %v3769_v14  ;;  %v4253_v8 = vpop.f32.mrf.mxu1  ;;  %4835 = vst [vmem:[#allocation15_spill] sm:$0xff] %v4255_v40  ;;  %v4258_v61 = vpop.eup %2565  ;;  %2591 = vtanh.f32 %v4031_v23  ;;  %v4263_v27 = vrot.slane %v1192_v21, %v4836_v39 }
 0x1d3   : > { %v850_v4 = vpop.f32.mrf.mxu0  ;;  %2593 = vtanh.f32 %v4038_v35  ;;  %v1239_v23 = vadd.f32 %v4089_v13, %v4247_v62 }
 0x1d4   : > { %4834 = vst [vmem:[#allocation17_spill] sm:$0xff] %v4250_v7  ;;  %v4266_v60 = vadd.f32 %v4065_v59, %v849_v11  ;;  %v851_v10 = vadd.f32 %v850_v4, %v3763_v31  ;;  %v4269_v22 = vpop.f32.mrf.mxu1  ;;  %v4271_v7 = vpop.eup %2567  ;;  %2595 = vtanh.f32 %v4046_v63  ;;  %v1241_v63 = vadd.f32 %v4101_v33, %v4263_v27 }
 0x1d5   : > { %v852_v6 = vpop.f32.mrf.mxu0  ;;  %v4274_v40 = vpop.eup %2569  ;;  %2597 = vtanh.f32 %v4054_v36 }
 0x1d6   : > { %4837 = vst [vmem:[#allocation29_spill] sm:$0xff] %v4266_v60  ;;  %v4280_v21 = vadd.f32 %v4073_v25, %v851_v10  ;;  %v853_v59 = vadd.f32 %v852_v6, %v3769_v14  ;;  %v4283_v31 = vpop.f32.mrf.mxu1  ;;  %v4285_v48 = vpop.eup %2571  ;;  %2599 = vtanh.f32 %v4062_v0  ;;  %v1243_v0 = vadd.f32 %v4113_v5, %v4247_v62 }
 0x1d7   : > { %v1431_v35 = vpop.f32.mrf.mxu0  ;;  %v4288_v11 = vpop.eup %2573  ;;  %2601 = vtanh.f32 %v4070_v50  ;;  %v1245_v50 = vadd.f32 %v4125_v1, %v4263_v27 }
 0x1d8   : > { %4838 = vst [vmem:[#allocation30_spill] sm:$0xff] %v4280_v21  ;;  %v4294_v13 = vadd.f32 %v4081_v56, %v853_v59  ;;  %v4296_v25 = vpop.f32.mrf.mxu1  ;;  %v1432_v14 = vadd.f32 %v1431_v35, %v1239_v23  ;;  %v4298_v4 = vpop.eup %2575  ;;  %2603 = vtanh.f32 %v4078_v53 }
 0x1d9   : > { %v1433_v39 = vpop.f32.mrf.mxu0  ;;  %v4301_v36 = vpop.eup %2577  ;;  %2605 = vtanh.f32 %v4086_v45  ;;  %v1249_v45 = vadd.f32 %v4137_v55, %v4247_v62 }
 0x1da   : > { %4839 = vst [vmem:[#allocation31_spill] sm:$0xff] %v4294_v13  ;;  %v2333_v10 = vmul.f32 -1.442695, %v1432_v14  ;;  %v4306_v33 = vpop.f32.mrf.mxu1  ;;  %v1434_v56 = vadd.f32 %v1433_v39, %v1241_v63  ;;  %v4308_v6 = vpop.eup %2579 }
 0x1db   : > { %v1435_v23 = vpop.f32.mrf.mxu0  ;;  %v4311_v59 = vpop.eup %2581 }
 0x1dc   : > { %2607 = vpow2.f32 %v2333_v10  ;;  %v2334_v35 = vmul.f32 -1.442695, %v1434_v56  ;;  %v4315_v53 = vpop.f32.mrf.mxu1  ;;  %v1436_v13 = vadd.f32 %v1435_v23, %v1243_v0  ;;  %v4317_v5 = vpop.eup %2583 }
 0x1dd   : > { %2609 = vtanh.f32 %v4098_v18  ;;  %v1437_v63 = vpop.f32.mrf.mxu0  ;;  %v4320_v14 = vpop.eup %2585  ;;  %v1251_v18 = vadd.f32 %v4149_v34, %v4263_v27 }
 0x1de   : > { %2611 = vpow2.f32 %v2334_v35  ;;  %v2335_v39 = vmul.f32 -1.442695, %v1436_v13  ;;  %v4324_v21 = vpop.f32.mrf.mxu1  ;;  %v1438_v1 = vadd.f32 %v1437_v63, %v1245_v50  ;;  %v4326_v10 = vpop.eup %2587 }
 0x1df   : > { %2613 = vtanh.f32 %v4110_v30  ;;  %v1441_v0 = vpop.f32.mrf.mxu0  ;;  %v4329_v56 = vpop.eup %2589  ;;  %v1253_v30 = vadd.f32 %v4161_v51, %v4247_v62 }
 0x1e0   : > { %4840 = vst [vmem:[#allocation32_spill] sm:$0xff] %v4329_v56  ;;  %2615 = vpow2.f32 %v2335_v39  ;;  %v2336_v23 = vmul.f32 -1.442695, %v1438_v1  ;;  %v4333_v60 = vpop.f32.mrf.mxu1  ;;  %v1442_v55 = vadd.f32 %v1441_v0, %v1249_v45  ;;  %v4335_v35 = vpop.eup %2591 }
 0x1e1   : > { %2617 = vtanh.f32 %v4122_v29  ;;  %v1443_v13 = vpop.f32.mrf.mxu0  ;;  %v4338_v50 = vpop.eup %2593  ;;  %v1255_v29 = vadd.f32 %v4173_v58, %v4263_v27 }
 0x1e2   : > { %4841 = vst [vmem:[#allocation33_spill] sm:$0xff] %v4338_v50  ;;  %2619 = vpow2.f32 %v2336_v23  ;;  %v2337_v63 = vmul.f32 -1.442695, %v1442_v55  ;;  %v4342_v56 = vpop.f32.mrf.mxu1  ;;  %v1444_v34 = vadd.f32 %v1443_v13, %v1251_v18  ;;  %v4344_v39 = vpop.eup %2595 }
 0x1e3   : > { %2621 = vtanh.f32 %v4134_v9  ;;  %v1445_v45 = vpop.f32.mrf.mxu0  ;;  %v4347_v1 = vpop.eup %2597  ;;  %v1259_v9 = vadd.f32 %v4185_v26, %v4247_v62 }
 0x1e4   : > { %4842 = vst [vmem:[#allocation34_spill] sm:$0xff] %v4347_v1  ;;  %2623 = vpow2.f32 %v2337_v63  ;;  %v2338_v0 = vmul.f32 -1.442695, %v1444_v34  ;;  %v4351_v50 = vpop.f32.mrf.mxu1  ;;  %v1446_v51 = vadd.f32 %v1445_v45, %v1253_v30  ;;  %v4353_v23 = vpop.eup %2599 }
 0x1e5   : > { %4843 = vst [vmem:[#allocation35_spill] sm:$0xff] %v4353_v23  ;;  %2625 = vtanh.f32 %v4194_v17  ;;  %v1447_v18 = vpop.f32.mrf.mxu0  ;;  %v4356_v55 = vpop.eup %2601  ;;  %v1261_v17 = vadd.f32 %v4197_v12, %v4263_v27 }
 0x1e6   : > { %4844 = vst [vmem:[#allocation36_spill] sm:$0xff] %v4356_v55  ;;  %2627 = vpow2.f32 %v2338_v0  ;;  %v2339_v13 = vmul.f32 -1.442695, %v1446_v51  ;;  %v4360_v1 = vpop.f32.mrf.mxu1  ;;  %v1448_v58 = vadd.f32 %v1447_v18, %v1255_v29  ;;  %v4362_v63 = vpop.eup %2603  ;;  %v1263_v29 = vadd.f32 %v4213_v24, %v4247_v62 }
 0x1e7   : > { %4845 = vst [vmem:[#allocation37_spill] sm:$0xff] %v4362_v63  ;;  %2629 = vtanh.f32 %v4210_v46  ;;  %v1451_v30 = vpop.f32.mrf.mxu0  ;;  %v4365_v34 = vpop.eup %2605 }
 0x1e8   : > { %4846 = vst [vmem:[#allocation38_spill] sm:$0xff] %v4365_v34  ;;  %2631 = vpow2.f32 %v2339_v13  ;;  %v2340_v45 = vmul.f32 -1.442695, %v1448_v58  ;;  %v4369_v55 = vpop.f32.mrf.mxu1  ;;  %v1452_v26 = vadd.f32 %v1451_v30, %v1259_v9  ;;  %v1265_v9 = vadd.f32 %v4225_v2, %v4263_v27 }
 0x1e9   : > { %v2608_v0 = vpop.eup %2607  ;;  %2633 = vtanh.f32 %v4222_v44  ;;  %v1453_v51 = vpop.f32.mrf.mxu0 }
 0x1ea   : > { %v4374_v18 = vpop.eup %2609  ;;  %v1846_v46 = vadd.f32 1.0, %v2608_v0  ;;  %2635 = vpow2.f32 %v2340_v45  ;;  %v2341_v34 = vmul.f32 -1.442695, %v1452_v26  ;;  %v4376_v63 = vpop.f32.mrf.mxu1  ;;  %v1454_v12 = vadd.f32 %v1453_v51, %v1261_v17 }
 0x1eb   : > { %4847 = vst [vmem:[#allocation39_spill] sm:$0xff] %v4374_v18  ;;  %v2612_v13 = vpop.eup %2611  ;;  %2637 = vtanh.f32 %v4234_v32  ;;  %v1455_v58 = vpop.f32.mrf.mxu0  ;;  %v1269_v26 = vadd.f32 %v4237_v19, %v4247_v62 }
 0x1ec   : > { %v4381_v44 = vpop.eup %2613  ;;  %2639 = vrcp.f32 %v1846_v46  ;;  %v1847_v24 = vadd.f32 1.0, %v2612_v13  ;;  %v2342_v30 = vmul.f32 -1.442695, %v1454_v12  ;;  %v4383_v23 = vpop.f32.mrf.mxu1  ;;  %v1456_v0 = vadd.f32 %v1455_v58, %v1263_v29 }
 0x1ed   : > { %4848 = vst [vmem:[#allocation40_spill] sm:$0xff] %v4381_v44  ;;  %v2616_v45 = vpop.eup %2615  ;;  %2641 = vpow2.f32 %v2341_v34  ;;  %v1457_v17 = vpop.f32.mrf.mxu0  ;;  %v1271_v12 = vadd.f32 %v4253_v8, %v4263_v27 }
 0x1ee   : > { %v4387_v51 = vpop.eup %2617  ;;  %2643 = vrcp.f32 %v1847_v24  ;;  %v1848_v32 = vadd.f32 1.0, %v2616_v45  ;;  %v2343_v2 = vmul.f32 -1.442695, %v1456_v0  ;;  %v4389_v18 = vpop.f32.mrf.mxu1  ;;  %v1458_v44 = vadd.f32 %v1457_v17, %v1265_v9 }
 0x1ef   : > { %4849 = vst [vmem:[#allocation41_spill] sm:$0xff] %v4387_v51  ;;  %v2620_v46 = vpop.eup %2619  ;;  %2645 = vpow2.f32 %v2342_v30  ;;  %v1461_v29 = vpop.f32.mrf.mxu0  ;;  %v1273_v0 = vadd.f32 %v4269_v22, %v4247_v62 }
 0x1f0   : > { %v4393_v13 = vpop.eup %2621  ;;  %2647 = vrcp.f32 %v1848_v32  ;;  %v1849_v19 = vadd.f32 1.0, %v2620_v46  ;;  %v2344_v34 = vmul.f32 -1.442695, %v1458_v44  ;;  %v4395_v58 = vpop.f32.mrf.mxu1  ;;  %v1462_v51 = vadd.f32 %v1461_v29, %v1269_v26 }
 0x1f1   : > { %4850 = vst [vmem:[#allocation42_spill] sm:$0xff] %v4393_v13  ;;  %v2624_v24 = vpop.eup %2623  ;;  %2649 = vpow2.f32 %v2343_v2  ;;  %v1463_v9 = vpop.f32.mrf.mxu0  ;;  %v1275_v44 = vadd.f32 %v4283_v31, %v4263_v27 }
 0x1f2   : > { %v4399_v45 = vpop.eup %2625  ;;  %2651 = vrcp.f32 %v1849_v19  ;;  %v1850_v8 = vadd.f32 1.0, %v2624_v24  ;;  %v2345_v30 = vmul.f32 -1.442695, %v1462_v51  ;;  %v4401_v17 = vpop.f32.mrf.mxu1  ;;  %v1464_v13 = vadd.f32 %v1463_v9, %v1271_v12 }
 0x1f3   : > { %4851 = vst [vmem:[#allocation43_spill] sm:$0xff] %v4399_v45  ;;  %v2628_v32 = vpop.eup %2627  ;;  %2653 = vpow2.f32 %v2344_v34  ;;  %v1465_v26 = vpop.f32.mrf.mxu0  ;;  %v1279_v51 = vadd.f32 %v4296_v25, %v4247_v62 }
 0x1f4   : > { %v4405_v46 = vpop.eup %2629  ;;  %2655 = vrcp.f32 %v1850_v8  ;;  %v1851_v22 = vadd.f32 1.0, %v2628_v32  ;;  %v2346_v2 = vmul.f32 -1.442695, %v1464_v13  ;;  %v4407_v29 = vpop.f32.mrf.mxu1  ;;  %v1466_v19 = vadd.f32 %v1465_v26, %v1273_v0 }
 0x1f5   : > { %4852 = vst [vmem:[#allocation44_spill] sm:$0xff] %v4405_v46  ;;  %v2632_v24 = vpop.eup %2631  ;;  %2657 = vpow2.f32 %v2345_v30  ;;  %v1467_v12 = vpop.f32.mrf.mxu0  ;;  %v1281_v13 = vadd.f32 %v4306_v33, %v4263_v27 }
 0x1f6   : > { %v4411_v9 = vpop.eup %2633  ;;  %2659 = vrcp.f32 %v1851_v22  ;;  %v1852_v31 = vadd.f32 1.0, %v2632_v24  ;;  %v2347_v34 = vmul.f32 -1.442695, %v1466_v19  ;;  %v4414_v45 = vpop.f32.mrf.mxu1  ;;  %v1468_v8 = vadd.f32 %v1467_v12, %v1275_v44 }
 0x1f7   : > { %4853 = vst [vmem:[#allocation45_spill] sm:$0xff] %v4411_v9  ;;  %v2636_v32 = vpop.eup %2635  ;;  %2661 = vpow2.f32 %v2346_v2  ;;  %v1471_v0 = vpop.f32.mrf.mxu0  ;;  %v1283_v19 = vadd.f32 %v4315_v53, %v4247_v62 }
 0x1f8   : > { %v4418_v26 = vpop.eup %2637  ;;  %2663 = vrcp.f32 %v1852_v31  ;;  %v1853_v25 = vadd.f32 1.0, %v2636_v32  ;;  %v2348_v30 = vmul.f32 -1.442695, %v1468_v8  ;;  %v4420_v46 = vpop.f32.mrf.mxu1  ;;  %v1472_v9 = vadd.f32 %v1471_v0, %v1279_v51 }
 0x1f9   : > { %4854 = vst [vmem:[#allocation46_spill] sm:$0xff] %v4418_v26  ;;  %v2640_v22 = vpop.eup %2639  ;;  %2665 = vpow2.f32 %v2347_v34  ;;  %v1473_v44 = vpop.f32.mrf.mxu0  ;;  %v1285_v8 = vadd.f32 %v4324_v21, %v4263_v27  ;;  %v1289_v21 = vadd.f32 %v4333_v60, %v4247_v62 }
 0x1fa   : > { %v2642_v24 = vpop.eup %2641  ;;  %v2038_v33 = vmul.f32 %v2640_v22, %v4091_v15  ;;  %2667 = vrcp.f32 %v1853_v25  ;;  %v2349_v2 = vmul.f32 -1.442695, %v1472_v9  ;;  %v4425_v12 = vpop.f32.mrf.mxu1  ;;  %v1474_v31 = vadd.f32 %v1473_v44, %v1281_v13 }
 0x1fb   : > { %v2644_v32 = vpop.eup %2643  ;;  %v1854_v51 = vadd.f32 1.0, %v2642_v24  ;;  %2669 = vpow2.f32 %v2348_v30  ;;  %v1475_v0 = vpop.f32.mrf.mxu0 }
 0x1fc   : > { %v2646_v26 = vpop.eup %2645  ;;  %2102 = vst [vmem:[%s4431_s16] sm:$0xff] %v2038_v33  ;;  %v2039_v15 = vmul.f32 %v2644_v32, %v4094_v54  ;;  %2671 = vpow2.f32 %v2349_v2  ;;  %v2350_v53 = vmul.f32 -1.442695, %v1474_v31  ;;  %v4435_v9 = vpop.f32.mrf.mxu1  ;;  %v1476_v34 = vadd.f32 %v1475_v0, %v1283_v19 }
 0x1fd   : > { %v2648_v13 = vpop.eup %2647  ;;  %2673 = vrcp.f32 %v1854_v51  ;;  %v1855_v25 = vadd.f32 1.0, %v2646_v26  ;;  %v1477_v30 = vpop.f32.mrf.mxu0  ;;  %v1291_v19 = vadd.f32 %v4342_v56, %v4263_v27 }
 0x1fe   : > { %v2650_v22 = vpop.eup %2649  ;;  %2103 = vst [vmem:[%s4431_s16 + $0x8] sm:$0xff] %v2039_v15  ;;  %v2040_v44 = vmul.f32 %v2648_v13, %v4103_v37  ;;  %2675 = vpow2.f32 %v2350_v53  ;;  %v2351_v24 = vmul.f32 -1.442695, %v1476_v34  ;;  %v4441_v54 = vpop.f32.mrf.mxu1  ;;  %v1478_v33 = vadd.f32 %v1477_v30, %v1285_v8 }
 0x1ff   : > { %v2652_v2 = vpop.eup %2651  ;;  %2677 = vrcp.f32 %v1855_v25  ;;  %v1856_v60 = vadd.f32 1.0, %v2650_v22  ;;  %v1481_v31 = vpop.f32.mrf.mxu0  ;;  %v1293_v8 = vadd.f32 %v4351_v50, %v4247_v62 }
 0x200   : > { %v2654_v32 = vpop.eup %2653  ;;  %2104 = vst [vmem:[%s4431_s16 + $0x10] sm:$0xff] %v2040_v44  ;;  %v2041_v26 = vmul.f32 %v2652_v2, %v4106_v20  ;;  %2679 = vpow2.f32 %v2351_v24  ;;  %v2352_v51 = vmul.f32 -1.442695, %v1478_v33  ;;  %v4447_v37 = vpop.f32.mrf.mxu1  ;;  %v1482_v0 = vadd.f32 %v1481_v31, %v1289_v21 }
 0x201   : > { %v2656_v15 = vpop.eup %2655  ;;  %2681 = vrcp.f32 %v1856_v60  ;;  %v1857_v56 = vadd.f32 1.0, %v2654_v32  ;;  %v1483_v53 = vpop.f32.mrf.mxu0  ;;  %v1295_v21 = vadd.f32 %v4360_v1, %v4263_v27 }
 0x202   : > { %v2658_v34 = vpop.eup %2657  ;;  %2105 = vst [vmem:[%s4431_s16 + $0x18] sm:$0xff] %v2041_v26  ;;  %v2042_v13 = vmul.f32 %v2656_v15, %v4115_v47  ;;  %2683 = vpow2.f32 %v2352_v51  ;;  %v2353_v25 = vmul.f32 -1.442695, %v1482_v0  ;;  %v4453_v20 = vpop.f32.mrf.mxu1  ;;  %v1484_v30 = vadd.f32 %v1483_v53, %v1291_v19 }
 0x203   : > { %v2660_v22 = vpop.eup %2659  ;;  %2685 = vrcp.f32 %v1857_v56  ;;  %v1858_v50 = vadd.f32 1.0, %v2658_v34  ;;  %v1485_v44 = vpop.f32.mrf.mxu0  ;;  %v1299_v19 = vadd.f32 %v4369_v55, %v4247_v62 }
 0x204   : > { %v2662_v24 = vpop.eup %2661  ;;  %2106 = vst [vmem:[%s4431_s16 + $0x20] sm:$0xff] %v2042_v13  ;;  %v2043_v33 = vmul.f32 %v2660_v22, %v4118_v57  ;;  %2687 = vpow2.f32 %v2353_v25  ;;  %v2354_v2 = vmul.f32 -1.442695, %v1484_v30  ;;  %v4459_v47 = vpop.f32.mrf.mxu1  ;;  %v1486_v60 = vadd.f32 %v1485_v44, %v1293_v8 }
 0x205   : > { %v2664_v31 = vpop.eup %2663  ;;  %2689 = vrcp.f32 %v1858_v50  ;;  %v1859_v1 = vadd.f32 1.0, %v2662_v24  ;;  %v1487_v32 = vpop.f32.mrf.mxu0  ;;  %v1301_v8 = vadd.f32 %v4376_v63, %v4263_v27 }
 0x206   : > { %v2666_v26 = vpop.eup %2665  ;;  %2107 = vst [vmem:[%s4431_s16 + $0x28] sm:$0xff] %v2043_v33  ;;  %v2044_v51 = vmul.f32 %v2664_v31, %v4127_v3  ;;  %2691 = vpow2.f32 %v2354_v2  ;;  %v2355_v0 = vmul.f32 -1.442695, %v1486_v60  ;;  %v4465_v57 = vpop.f32.mrf.mxu1  ;;  %v1488_v15 = vadd.f32 %v1487_v32, %v1295_v21 }
 0x207   : > { %v2668_v56 = vpop.eup %2667  ;;  %2693 = vrcp.f32 %v1859_v1  ;;  %v1860_v55 = vadd.f32 1.0, %v2666_v26  ;;  %v1491_v53 = vpop.f32.mrf.mxu0  ;;  %v1303_v21 = vadd.f32 %v4383_v23, %v4247_v62 }
 0x208   : > { %v2670_v34 = vpop.eup %2669  ;;  %2108 = vst [vmem:[%s4431_s16 + $0x30] sm:$0xff] %v2044_v51  ;;  %v2045_v13 = vmul.f32 %v2668_v56, %v4130_v41  ;;  %2695 = vpow2.f32 %v2355_v0  ;;  %v2356_v25 = vmul.f32 -1.442695, %v1488_v15  ;;  %v4471_v3 = vpop.f32.mrf.mxu1  ;;  %v1492_v30 = vadd.f32 %v1491_v53, %v1299_v19 }
 0x209   : > { %v2672_v22 = vpop.eup %2671  ;;  %2697 = vrcp.f32 %v1860_v55  ;;  %v1861_v50 = vadd.f32 1.0, %v2670_v34  ;;  %v1493_v63 = vpop.f32.mrf.mxu0  ;;  %v1305_v19 = vadd.f32 %v4389_v18, %v4263_v27 }
 0x20a   : > { %v2674_v44 = vpop.eup %2673  ;;  %2109 = vst [vmem:[%s4431_s16 + $0x38] sm:$0xff] %v2045_v13  ;;  %v1862_v24 = vadd.f32 1.0, %v2672_v22  ;;  %2699 = vpow2.f32 %v2356_v25  ;;  %v2357_v33 = vmul.f32 -1.442695, %v1492_v30  ;;  %v4476_v2 = vpop.f32.mrf.mxu1  ;;  %v1494_v41 = vadd.f32 %v1493_v63, %v1301_v8 }
 0x20b   : > { %v2676_v60 = vpop.eup %2675  ;;  %v2046_v31 = vmul.f32 %v2674_v44, %v4139_v49  ;;  %2701 = vrcp.f32 %v1861_v50  ;;  %v1495_v23 = vpop.f32.mrf.mxu0  ;;  %v1309_v49 = vadd.f32 %v4395_v58, %v4247_v62 }
 0x20c   : > { %v2678_v1 = vpop.eup %2677  ;;  %2703 = vrcp.f32 %v1862_v24  ;;  %v1863_v32 = vadd.f32 1.0, %v2676_v60  ;;  %v2358_v26 = vmul.f32 -1.442695, %v1494_v41  ;;  %v4481_v51 = vpop.f32.mrf.mxu1  ;;  %v1496_v0 = vadd.f32 %v1495_v23, %v1303_v21 }
 0x20d   : > { %v2680_v15 = vpop.eup %2679  ;;  %2110 = vst [vmem:[%s4431_s16 + $0x40] sm:$0xff] %v2046_v31  ;;  %v2047_v56 = vmul.f32 %v2678_v1, %v4142_v28  ;;  %2705 = vpow2.f32 %v2357_v33  ;;  %v1497_v8 = vpop.f32.mrf.mxu0  ;;  %v1311_v28 = vadd.f32 %v4401_v17, %v4263_v27 }
 0x20e   : > { %v2682_v18 = vpop.eup %2681  ;;  %2707 = vrcp.f32 %v1863_v32  ;;  %v1864_v55 = vadd.f32 1.0, %v2680_v15  ;;  %v2359_v53 = vmul.f32 -1.442695, %v1496_v0  ;;  %v4487_v34 = vpop.f32.mrf.mxu1  ;;  %v1498_v13 = vadd.f32 %v1497_v8, %v1305_v19 }
 0x20f   : > { %v2684_v25 = vpop.eup %2683  ;;  %2111 = vst [vmem:[%s4431_s16 + $0x48] sm:$0xff] %v2047_v56  ;;  %v2048_v30 = vmul.f32 %v2682_v18, %v4151_v38  ;;  %2709 = vpow2.f32 %v2358_v26  ;;  %v1501_v22 = vpop.f32.mrf.mxu0  ;;  %v1313_v38 = vadd.f32 %v4407_v29, %v4247_v62 }
 0x210   : > { %v2686_v58 = vpop.eup %2685  ;;  %2711 = vrcp.f32 %v1864_v55  ;;  %v1865_v21 = vadd.f32 1.0, %v2684_v25  ;;  %v2360_v50 = vmul.f32 -1.442695, %v1498_v13  ;;  %v4493_v63 = vpop.f32.mrf.mxu1  ;;  %v1502_v44 = vadd.f32 %v1501_v22, %v1309_v49  ;;  %v4855_v22 = vld [vmem:[#allocation21_spill] sm:$0xff] }
 0x211   : > { %v2688_v24 = vpop.eup %2687  ;;  %2112 = vst [vmem:[%s4431_s16 + $0x50] sm:$0xff] %v2048_v30  ;;  %v2049_v33 = vmul.f32 %v2686_v58, %v4154_v43  ;;  %2713 = vpow2.f32 %v2359_v53  ;;  %v1503_v41 = vpop.f32.mrf.mxu0  ;;  %v1315_v43 = vadd.f32 %v4414_v45, %v4263_v27 }
 0x212   : > { %v2690_v17 = vpop.eup %2689  ;;  %2715 = vrcp.f32 %v1865_v21  ;;  %v1866_v60 = vadd.f32 1.0, %v2688_v24  ;;  %v2361_v31 = vmul.f32 -1.442695, %v1502_v44  ;;  %v4499_v19 = vpop.f32.mrf.mxu1  ;;  %v1504_v23 = vadd.f32 %v1503_v41, %v1311_v28  ;;  %v4856_v41 = vld [vmem:[#allocation22_spill] sm:$0xff] }
 0x213   : > { %v2692_v1 = vpop.eup %2691  ;;  %2113 = vst [vmem:[%s4431_s16 + $0x58] sm:$0xff] %v2049_v33  ;;  %v2050_v32 = vmul.f32 %v2690_v17, %v4163_v42  ;;  %2717 = vpow2.f32 %v2360_v50  ;;  %v1505_v26 = vpop.f32.mrf.mxu0  ;;  %v1319_v42 = vadd.f32 %v4420_v46, %v4247_v62 }
 0x214   : > { %v2694_v29 = vpop.eup %2693  ;;  %2719 = vrcp.f32 %v1866_v60  ;;  %v1867_v0 = vadd.f32 1.0, %v2692_v1  ;;  %v2362_v15 = vmul.f32 -1.442695, %v1504_v23  ;;  %v4505_v56 = vpop.f32.mrf.mxu1  ;;  %v1506_v49 = vadd.f32 %v1505_v26, %v1313_v38  ;;  %v4857_v23 = vld [vmem:[#allocation24_spill] sm:$0xff] }
 0x215   : > { %v2696_v8 = vpop.eup %2695  ;;  %2114 = vst [vmem:[%s4431_s16 + $0x60] sm:$0xff] %v2050_v32  ;;  %v2051_v18 = vmul.f32 %v2694_v29, %v4166_v52  ;;  %2721 = vpow2.f32 %v2361_v31  ;;  %v1507_v55 = vpop.f32.mrf.mxu0  ;;  %v1321_v52 = vadd.f32 %v4425_v12, %v4263_v27  ;;  %v1323_v60 = vadd.f32 %v4435_v9, %v4247_v62 }
 0x216   : > { %v2698_v45 = vpop.eup %2697  ;;  %2723 = vrcp.f32 %v1867_v0  ;;  %v1868_v53 = vadd.f32 1.0, %v2696_v8  ;;  %v2363_v13 = vmul.f32 -1.442695, %v1506_v49  ;;  %v4511_v25 = vpop.f32.mrf.mxu1  ;;  %v1508_v30 = vadd.f32 %v1507_v55, %v1315_v43  ;;  %v4858_v8 = vld [vmem:[#allocation25_spill] sm:$0xff] }
 0x217   : > { %v2700_v28 = vpop.eup %2699  ;;  %2115 = vst [vmem:[%s4431_s16 + $0x68] sm:$0xff] %v2051_v18  ;;  %v2052_v58 = vmul.f32 %v2698_v45, %v4855_v22  ;;  %2725 = vpow2.f32 %v2362_v15  ;;  %v1511_v21 = vpop.f32.mrf.mxu0  ;;  %v1325_v0 = vadd.f32 %v4441_v54, %v4263_v27  ;;  %v4859_v22 = vld [vmem:[#allocation26_spill] sm:$0xff] }
 0x218   : > { %v2702_v46 = vpop.eup %2701  ;;  %2727 = vrcp.f32 %v1868_v53  ;;  %v1869_v50 = vadd.f32 1.0, %v2700_v28  ;;  %v2364_v44 = vmul.f32 -1.442695, %v1508_v30  ;;  %v4517_v24 = vpop.f32.mrf.mxu1  ;;  %v1512_v33 = vadd.f32 %v1511_v21, %v1319_v42 }
 0x219   : > { %v2704_v38 = vpop.eup %2703  ;;  %2116 = vst [vmem:[%s4431_s16 + $0x70] sm:$0xff] %v2052_v58  ;;  %v2053_v17 = vmul.f32 %v2702_v46, %v4856_v41  ;;  %2729 = vpow2.f32 %v2363_v13  ;;  %v1513_v12 = vpop.f32.mrf.mxu0  ;;  %v1329_v13 = vadd.f32 %v4447_v37, %v4247_v62  ;;  %v4860_v41 = vld [vmem:[#allocation27_spill] sm:$0xff] }
 0x21a   : > { %v2706_v31 = vpop.eup %2705  ;;  %v2054_v1 = vmul.f32 %v2704_v38, %v4857_v23  ;;  %2731 = vrcp.f32 %v1869_v50  ;;  %v2365_v32 = vmul.f32 -1.442695, %v1512_v33  ;;  %v4524_v43 = vpop.f32.mrf.mxu1  ;;  %v1514_v26 = vadd.f32 %v1513_v12, %v1321_v52 }
 0x21b   : > { %v2708_v29 = vpop.eup %2707  ;;  %2117 = vst [vmem:[%s4431_s16 + $0x78] sm:$0xff] %v2053_v17  ;;  %v1870_v15 = vadd.f32 1.0, %v2706_v31  ;;  %2733 = vpow2.f32 %v2364_v44  ;;  %v1515_v9 = vpop.f32.mrf.mxu0  ;;  %v1331_v44 = vadd.f32 %v4453_v20, %v4263_v27 }
 0x21c   : > { %v2710_v49 = vpop.eup %2709  ;;  %2118 = vst [vmem:[%s4431_s16 + $0x80] sm:$0xff] %v2054_v1  ;;  %v2055_v18 = vmul.f32 %v2708_v29, %v4858_v8  ;;  %2735 = vpow2.f32 %v2365_v32  ;;  %v2366_v42 = vmul.f32 -1.442695, %v1514_v26  ;;  %v4531_v55 = vpop.f32.mrf.mxu1  ;;  %v1516_v45 = vadd.f32 %v1515_v9, %v1323_v60  ;;  %v4861_v29 = vld [vmem:[#allocation28_spill] sm:$0xff] }
 0x21d   : > { %v2712_v53 = vpop.eup %2711  ;;  %2737 = vrcp.f32 %v1870_v15  ;;  %v1871_v54 = vadd.f32 1.0, %v2710_v49  ;;  %v1517_v30 = vpop.f32.mrf.mxu0  ;;  %v1333_v1 = vadd.f32 %v4459_v47, %v4247_v62 }
 0x21e   : > { %v2714_v28 = vpop.eup %2713  ;;  %2119 = vst [vmem:[%s4431_s16 + $0x88] sm:$0xff] %v2055_v18  ;;  %v2056_v58 = vmul.f32 %v2712_v53, %v4859_v22  ;;  %2739 = vpow2.f32 %v2366_v42  ;;  %v2367_v52 = vmul.f32 -1.442695, %v1516_v45  ;;  %v4537_v21 = vpop.f32.mrf.mxu1  ;;  %v1518_v46 = vadd.f32 %v1517_v30, %v1325_v0  ;;  %v4862_v53 = vld [vmem:[#allocation12_spill] sm:$0xff] }
 0x21f   : > { %v2716_v50 = vpop.eup %2715  ;;  %2741 = vrcp.f32 %v1871_v54  ;;  %v1872_v37 = vadd.f32 1.0, %v2714_v28  ;;  %v1521_v33 = vpop.f32.mrf.mxu0  ;;  %v1335_v18 = vadd.f32 %v4465_v57, %v4263_v27 }
 0x220   : > { %v2718_v38 = vpop.eup %2717  ;;  %2120 = vst [vmem:[%s4431_s16 + $0x90] sm:$0xff] %v2056_v58  ;;  %v2057_v17 = vmul.f32 %v2716_v50, %v4860_v41  ;;  %2743 = vpow2.f32 %v2367_v52  ;;  %v2368_v60 = vmul.f32 -1.442695, %v1518_v46  ;;  %v4543_v12 = vpop.f32.mrf.mxu1  ;;  %v1522_v31 = vadd.f32 %v1521_v33, %v1329_v13  ;;  %v4863_v50 = vld [vmem:[#allocation14_spill] sm:$0xff] }
 0x221   : > { %v2720_v23 = vpop.eup %2719  ;;  %2745 = vrcp.f32 %v1872_v37  ;;  %v1873_v20 = vadd.f32 1.0, %v2718_v38  ;;  %v1523_v32 = vpop.f32.mrf.mxu0  ;;  %v1339_v58 = vadd.f32 %v4471_v3, %v4247_v62 }
 0x222   : > { %v2722_v26 = vpop.eup %2721  ;;  %2121 = vst [vmem:[%s4431_s16 + $0x98] sm:$0xff] %v2057_v17  ;;  %v2058_v0 = vmul.f32 %v2720_v23, %v4861_v29  ;;  %2747 = vpow2.f32 %v2368_v60  ;;  %v2369_v15 = vmul.f32 -1.442695, %v1522_v31  ;;  %v4549_v9 = vpop.f32.mrf.mxu1  ;;  %v1524_v49 = vadd.f32 %v1523_v32, %v1331_v44  ;;  %v4864_v23 = vld [vmem:[#allocation13_spill] sm:$0xff] }
 0x223   : > { %v2724_v8 = vpop.eup %2723  ;;  %2749 = vrcp.f32 %v1873_v20  ;;  %v1874_v47 = vadd.f32 1.0, %v2722_v26  ;;  %v1525_v42 = vpop.f32.mrf.mxu0  ;;  %v1341_v17 = vadd.f32 %v4476_v2, %v4263_v27 }
 0x224   : > { %v2726_v45 = vpop.eup %2725  ;;  %2122 = vst [vmem:[%s4431_s16 + $0xa0] sm:$0xff] %v2058_v0  ;;  %v2059_v13 = vmul.f32 %v2724_v8, %v4862_v53  ;;  %2751 = vpow2.f32 %v2369_v15  ;;  %v2370_v54 = vmul.f32 -1.442695, %v1524_v49  ;;  %v4555_v30 = vpop.f32.mrf.mxu1  ;;  %v1526_v28 = vadd.f32 %v1525_v42, %v1333_v1  ;;  %v4865_v53 = vld [vmem:[#allocation16_spill] sm:$0xff] }
 0x225   : > { %v2728_v22 = vpop.eup %2727  ;;  %2753 = vrcp.f32 %v1874_v47  ;;  %v1875_v57 = vadd.f32 1.0, %v2726_v45  ;;  %v1527_v52 = vpop.f32.mrf.mxu0  ;;  %v1343_v0 = vadd.f32 %v4481_v51, %v4247_v62 }
 0x226   : > { %v2730_v46 = vpop.eup %2729  ;;  %2123 = vst [vmem:[%s4431_s16 + $0xa8] sm:$0xff] %v2059_v13  ;;  %v2060_v44 = vmul.f32 %v2728_v22, %v4863_v50  ;;  %2755 = vpow2.f32 %v2370_v54  ;;  %v2371_v37 = vmul.f32 -1.442695, %v1526_v28  ;;  %v4561_v33 = vpop.f32.mrf.mxu1  ;;  %v1528_v38 = vadd.f32 %v1527_v52, %v1335_v18 }
 0x227   : > { %v2732_v41 = vpop.eup %2731  ;;  %2757 = vrcp.f32 %v1875_v57  ;;  %v1876_v3 = vadd.f32 1.0, %v2730_v46  ;;  %v1531_v60 = vpop.f32.mrf.mxu0  ;;  %v1345_v54 = vadd.f32 %v4487_v34, %v4263_v27 }
 0x228   : > { %v2734_v31 = vpop.eup %2733  ;;  %2124 = vst [vmem:[%s4431_s16 + $0xb0] sm:$0xff] %v2060_v44  ;;  %v2061_v1 = vmul.f32 %v2732_v41, %v4864_v23  ;;  %2759 = vpow2.f32 %v2371_v37  ;;  %v2372_v20 = vmul.f32 -1.442695, %v1528_v38  ;;  %v4567_v32 = vpop.f32.mrf.mxu1  ;;  %v1532_v26 = vadd.f32 %v1531_v60, %v1339_v58 }
 0x229   : > { %v2736_v29 = vpop.eup %2735  ;;  %2761 = vrcp.f32 %v1876_v3  ;;  %v1877_v15 = vadd.f32 1.0, %v2734_v31  ;;  %v1533_v2 = vpop.f32.mrf.mxu0  ;;  %v1349_v44 = vadd.f32 %v4493_v63, %v4247_v62  ;;  %v4866_v31 = vld [vmem:[#allocation15_spill] sm:$0xff] }
 0x22a   : > { %v2738_v49 = vpop.eup %2737  ;;  %2125 = vst [vmem:[%s4431_s16 + $0xb8] sm:$0xff] %v2061_v1  ;;  %v1878_v8 = vadd.f32 1.0, %v2736_v29  ;;  %2763 = vpow2.f32 %v2372_v20  ;;  %v2373_v18 = vmul.f32 -1.442695, %v1532_v26  ;;  %v4572_v47 = vpop.f32.mrf.mxu1  ;;  %v1534_v42 = vadd.f32 %v1533_v2, %v1341_v17 }
 0x22b   : > { %v2740_v45 = vpop.eup %2739  ;;  %v2062_v13 = vmul.f32 %v2738_v49, %v4865_v53  ;;  %2765 = vrcp.f32 %v1877_v15  ;;  %v1535_v51 = vpop.f32.mrf.mxu0  ;;  %v1353_v49 = vadd.f32 %v4505_v56, %v4247_v62  ;;  %v1359_v56 = vadd.f32 %v4517_v24, %v4247_v62 }
 0x22c   : > { %v2742_v28 = vpop.eup %2741  ;;  %2767 = vrcp.f32 %v1878_v8  ;;  %v1879_v22 = vadd.f32 1.0, %v2740_v45  ;;  %v2374_v58 = vmul.f32 -1.442695, %v1534_v42  ;;  %v4577_v57 = vpop.f32.mrf.mxu1  ;;  %v1536_v52 = vadd.f32 %v1535_v51, %v1343_v0 }
 0x22d   : > { %v2744_v46 = vpop.eup %2743  ;;  %2126 = vst [vmem:[%s4431_s16 + $0xc0] sm:$0xff] %v2062_v13  ;;  %v2063_v50 = vmul.f32 %v2742_v28, %v4242_v16  ;;  %2769 = vpow2.f32 %v2373_v18  ;;  %v1537_v37 = vpop.f32.mrf.mxu0  ;;  %v1351_v16 = vadd.f32 %v4499_v19, %v4263_v27  ;;  %v1363_v24 = vadd.f32 %v4531_v55, %v4247_v62 }
 0x22e   : > { %v2746_v34 = vpop.eup %2745  ;;  %2771 = vrcp.f32 %v1879_v22  ;;  %v1880_v38 = vadd.f32 1.0, %v2744_v46  ;;  %v2375_v41 = vmul.f32 -1.442695, %v1536_v52  ;;  %v4583_v17 = vpop.f32.mrf.mxu1  ;;  %v1538_v3 = vadd.f32 %v1537_v37, %v1345_v54 }
 0x22f   : > { %v2748_v60 = vpop.eup %2747  ;;  %2127 = vst [vmem:[%s4431_s16 + $0xc8] sm:$0xff] %v2063_v50  ;;  %v2064_v23 = vmul.f32 %v2746_v34, %v4866_v31  ;;  %2773 = vpow2.f32 %v2374_v58  ;;  %v1541_v1 = vpop.f32.mrf.mxu0  ;;  %v1381_v55 = vadd.f32 %v4572_v47, %v4263_v27 }
 0x230   : > { %v2750_v63 = vpop.eup %2749  ;;  %2775 = vrcp.f32 %v1880_v38  ;;  %v1881_v20 = vadd.f32 1.0, %v2748_v60  ;;  %v2376_v26 = vmul.f32 -1.442695, %v1538_v3  ;;  %v4589_v29 = vpop.f32.mrf.mxu1  ;;  %v1542_v0 = vadd.f32 %v1541_v1, %v1349_v44 }
 0x231   : > { %v2752_v15 = vpop.eup %2751  ;;  %2128 = vst [vmem:[%s4431_s16 + $0xd0] sm:$0xff] %v2064_v23  ;;  %v2065_v2 = vmul.f32 %v2750_v63, %v4258_v61  ;;  %2777 = vpow2.f32 %v2375_v41  ;;  %v1543_v8 = vpop.f32.mrf.mxu0  ;;  %v1355_v61 = vadd.f32 %v4511_v25, %v4263_v27  ;;  %v1361_v25 = vadd.f32 %v4524_v43, %v4263_v27 }
 0x232   : > { %v2754_v19 = vpop.eup %2753  ;;  %2779 = vrcp.f32 %v1881_v20  ;;  %v1882_v18 = vadd.f32 1.0, %v2752_v15  ;;  %v2377_v42 = vmul.f32 -1.442695, %v1542_v0  ;;  %v4595_v45 = vpop.f32.mrf.mxu1  ;;  %v1544_v53 = vadd.f32 %v1543_v8, %v1351_v16 }
 0x233   : > { %v2756_v13 = vpop.eup %2755  ;;  %2129 = vst [vmem:[%s4431_s16 + $0xd8] sm:$0xff] %v2065_v2  ;;  %v2066_v54 = vmul.f32 %v2754_v19, %v4271_v7  ;;  %2781 = vpow2.f32 %v2376_v26  ;;  %v1545_v51 = vpop.f32.mrf.mxu0  ;;  %v1379_v43 = vadd.f32 %v4567_v32, %v4247_v62 }
 0x234   : > { %v2758_v28 = vpop.eup %2757  ;;  %2783 = vrcp.f32 %v1882_v18  ;;  %v1883_v22 = vadd.f32 1.0, %v2756_v13  ;;  %v2378_v58 = vmul.f32 -1.442695, %v1544_v53  ;;  %v4603_v52 = vpop.f32.mrf.mxu1  ;;  %v1546_v46 = vadd.f32 %v1545_v51, %v1353_v49 }
 0x235   : > { %v2760_v50 = vpop.eup %2759  ;;  %2130 = vst [vmem:[%s4431_s16 + $0xe0] sm:$0xff] %v2066_v54  ;;  %v2067_v7 = vmul.f32 %v2758_v28, %v4274_v40  ;;  %2785 = vpow2.f32 %v2377_v42  ;;  %v1547_v44 = vpop.f32.mrf.mxu0  ;;  %v1365_v28 = vadd.f32 %v4537_v21, %v4263_v27 }
 0x236   : > { %v2762_v37 = vpop.eup %2761  ;;  %2787 = vrcp.f32 %v1883_v22  ;;  %v1884_v34 = vadd.f32 1.0, %v2760_v50  ;;  %v2379_v38 = vmul.f32 -1.442695, %v1546_v46  ;;  %v4611_v41 = vpop.f32.mrf.mxu1  ;;  %v1548_v3 = vadd.f32 %v1547_v44, %v1355_v61 }
 0x237   : > { %v2764_v60 = vpop.eup %2763  ;;  %2131 = vst [vmem:[%s4431_s16 + $0xe8] sm:$0xff] %v2067_v7  ;;  %v2068_v40 = vmul.f32 %v2762_v37, %v4285_v48  ;;  %2789 = vpow2.f32 %v2378_v58  ;;  %v1551_v31 = vpop.f32.mrf.mxu0  ;;  %v1383_v48 = vadd.f32 %v4577_v57, %v4247_v62  ;;  %v1385_v44 = vadd.f32 %v4583_v17, %v4263_v27 }
 0x238   : > { %v2766_v23 = vpop.eup %2765  ;;  %2791 = vrcp.f32 %v1884_v34  ;;  %v1885_v16 = vadd.f32 1.0, %v2764_v60  ;;  %v2380_v1 = vmul.f32 -1.442695, %v1548_v3  ;;  %v1552_v63 = vadd.f32 %v1551_v31, %v1359_v56  ;;  %v1571_v20 = vpop.f32.mrf.mxu1 }
 0x239   : > { %v2768_v26 = vpop.eup %2767  ;;  %2132 = vst [vmem:[%s4431_s16 + $0xf0] sm:$0xff] %v2068_v40  ;;  %v2069_v0 = vmul.f32 %v2766_v23, %v4288_v11  ;;  %2793 = vpow2.f32 %v2379_v38  ;;  %v1572_v32 = vadd.f32 %v1571_v20, %v1379_v43  ;;  %v1553_v47 = vpop.f32.mrf.mxu0 }
 0x23a   : > { %v2770_v15 = vpop.eup %2769  ;;  %v2070_v2 = vmul.f32 %v2768_v26, %v4298_v4  ;;  %2795 = vrcp.f32 %v1885_v16  ;;  %v2381_v49 = vmul.f32 -1.442695, %v1552_v63  ;;  %v1554_v8 = vadd.f32 %v1553_v47, %v1361_v25  ;;  %v1573_v19 = vpop.f32.mrf.mxu1 }
 0x23b   : > { %v2772_v18 = vpop.eup %2771  ;;  %2133 = vst [vmem:[%s4431_s16 + $0xf8] sm:$0xff] %v2069_v0  ;;  %v1886_v42 = vadd.f32 1.0, %v2770_v15  ;;  %2797 = vpow2.f32 %v2380_v1  ;;  %v2389_v53 = vmul.f32 -1.442695, %v1572_v32  ;;  %v1574_v11 = vadd.f32 %v1573_v19, %v1381_v55  ;;  %v1555_v13 = vpop.f32.mrf.mxu0 }
 0x23c   : > { %v2774_v57 = vpop.eup %2773  ;;  %2134 = vst [vmem:[%s4431_s16 + $0x100] sm:$0xff] %v2070_v2  ;;  %v2071_v54 = vmul.f32 %v2772_v18, %v4301_v36  ;;  %2799 = vpow2.f32 %v2381_v49  ;;  %v2382_v61 = vmul.f32 -1.442695, %v1554_v8  ;;  %v1556_v56 = vadd.f32 %v1555_v13, %v1363_v24  ;;  %v1575_v4 = vpop.f32.mrf.mxu1  ;;  %v4867_v18 = vld [vmem:[#allocation32_spill] sm:$0xff] }
 0x23d   : > { %v2776_v51 = vpop.eup %2775  ;;  %2801 = vrcp.f32 %v1886_v42  ;;  %v1887_v22 = vadd.f32 1.0, %v2774_v57  ;;  %v1557_v58 = vpop.f32.mrf.mxu0  ;;  %v2390_v7 = vmul.f32 -1.442695, %v1574_v11  ;;  %v1576_v25 = vadd.f32 %v1575_v4, %v1383_v48 }
 0x23e   : > { %v2778_v46 = vpop.eup %2777  ;;  %2135 = vst [vmem:[%s4431_s16 + $0x108] sm:$0xff] %v2071_v54  ;;  %v2072_v50 = vmul.f32 %v2776_v51, %v4308_v6  ;;  %2803 = vpow2.f32 %v2389_v53  ;;  %v1577_v37 = vpop.f32.mrf.mxu1  ;;  %v2383_v38 = vmul.f32 -1.442695, %v1556_v56  ;;  %v1558_v3 = vadd.f32 %v1557_v58, %v1365_v28 }
 0x23f   : > { %v2780_v36 = vpop.eup %2779  ;;  %2805 = vrcp.f32 %v1887_v22  ;;  %v1888_v24 = vadd.f32 1.0, %v2778_v46  ;;  %v2391_v55 = vmul.f32 -1.442695, %v1576_v25  ;;  %v1578_v31 = vadd.f32 %v1577_v37, %v1385_v44  ;;  %v1561_v17 = vpop.f32.mrf.mxu0  ;;  %v4868_v25 = vld [vmem:[#allocation33_spill] sm:$0xff] }
 0x240   : > { %v2782_v21 = vpop.eup %2781  ;;  %2136 = vst [vmem:[%s4431_s16 + $0x110] sm:$0xff] %v2072_v50  ;;  %v2073_v34 = vmul.f32 %v2780_v36, %v4311_v59  ;;  %2807 = vpow2.f32 %v2382_v61  ;;  %v1369_v59 = vadd.f32 %v4543_v12, %v4247_v62  ;;  %v2384_v20 = vmul.f32 -1.442695, %v1558_v3  ;;  %v1581_v26 = vpop.f32.mrf.mxu1 }
 0x241   : > { %v2784_v6 = vpop.eup %2783  ;;  %2809 = vrcp.f32 %v1888_v24  ;;  %v1889_v60 = vadd.f32 1.0, %v2782_v21  ;;  %v2392_v15 = vmul.f32 -1.442695, %v1578_v31  ;;  %v1563_v2 = vpop.f32.mrf.mxu0  ;;  %v1391_v53 = vadd.f32 %v4595_v45, %v4263_v27 }
 0x242   : > { %v2786_v40 = vpop.eup %2785  ;;  %2137 = vst [vmem:[%s4431_s16 + $0x118] sm:$0xff] %v2073_v34  ;;  %v2074_v43 = vmul.f32 %v2784_v6, %v4317_v5  ;;  %2811 = vpow2.f32 %v2390_v7  ;;  %v1389_v5 = vadd.f32 %v4589_v29, %v4247_v62  ;;  %v1562_v32 = vadd.f32 %v1561_v17, %v1369_v59 }
 0x243   : > { %v2788_v23 = vpop.eup %2787  ;;  %2813 = vrcp.f32 %v1889_v60  ;;  %v1890_v16 = vadd.f32 1.0, %v2786_v40  ;;  %v1565_v4 = vpop.f32.mrf.mxu0  ;;  %v1393_v46 = vadd.f32 %v4603_v52, %v4247_v62  ;;  %v1395_v60 = vadd.f32 %v4611_v41, %v4263_v27 }
 0x244   : > { %v2790_v1 = vpop.eup %2789  ;;  %2138 = vst [vmem:[%s4431_s16 + $0x120] sm:$0xff] %v2074_v43  ;;  %v2075_v63 = vmul.f32 %v2788_v23, %v4320_v14  ;;  %2815 = vpow2.f32 %v2383_v38  ;;  %v1371_v14 = vadd.f32 %v4549_v9, %v4263_v27  ;;  %v1582_v19 = vadd.f32 %v1581_v26, %v1389_v5  ;;  %v4871_v5 = vld [vmem:[#allocation36_spill] sm:$0xff] }
 0x245   : > { %v2792_v0 = vpop.eup %2791  ;;  %2817 = vrcp.f32 %v1890_v16  ;;  %v1891_v48 = vadd.f32 1.0, %v2790_v1  ;;  %v2385_v57 = vmul.f32 -1.442695, %v1562_v32  ;;  %v1373_v9 = vadd.f32 %v4555_v30, %v4247_v62  ;;  %v1567_v34 = vpop.f32.mrf.mxu0  ;;  %v4870_v1 = vld [vmem:[#allocation35_spill] sm:$0xff] }
 0x246   : > { %v2794_v47 = vpop.eup %2793  ;;  %2139 = vst [vmem:[%s4431_s16 + $0x128] sm:$0xff] %v2075_v63  ;;  %v2076_v12 = vmul.f32 %v2792_v0, %v4326_v10  ;;  %2819 = vpow2.f32 %v2391_v55  ;;  %v1583_v10 = vpop.f32.mrf.mxu1  ;;  %v1564_v54 = vadd.f32 %v1563_v2, %v1371_v14  ;;  %v2393_v45 = vmul.f32 -1.442695, %v1582_v19  ;;  %v4869_v55 = vld [vmem:[#allocation34_spill] sm:$0xff]  ;;  %v4872_v2 = vld [vmem:[#allocation37_spill] sm:$0xff] }
 0x247   : > { %v2796_v49 = vpop.eup %2795  ;;  %2821 = vrcp.f32 %v1891_v48  ;;  %v1892_v8 = vadd.f32 1.0, %v2794_v47  ;;  %v1584_v22 = vadd.f32 %v1583_v10, %v1391_v53  ;;  %v1566_v44 = vadd.f32 %v1565_v4, %v1373_v9  ;;  %v4874_v10 = vld [vmem:[#allocation39_spill] sm:$0xff] }
 0x248   : > { %v2798_v29 = vpop.eup %2797  ;;  %2140 = vst [vmem:[%s4431_s16 + $0x130] sm:$0xff] %v2076_v12  ;;  %v2077_v42 = vmul.f32 %v2796_v49, %v4867_v18  ;;  %2823 = vpow2.f32 %v2384_v20  ;;  %v1585_v7 = vpop.f32.mrf.mxu1  ;;  %v2386_v24 = vmul.f32 -1.442695, %v1564_v54  ;;  %v4873_v18 = vld [vmem:[#allocation38_spill] sm:$0xff]  ;;  %v4876_v9 = vld [vmem:[#allocation43_spill] sm:$0xff] }
 0x249   : > { %v2800_v11 = vpop.eup %2799  ;;  %2825 = vrcp.f32 %v1892_v8  ;;  %v1893_v13 = vadd.f32 1.0, %v2798_v29  ;;  %v2394_v38 = vmul.f32 -1.442695, %v1584_v22  ;;  %v1586_v3 = vadd.f32 %v1585_v7, %v1393_v46  ;;  %v4878_v22 = vld [vmem:[#allocation40_spill] sm:$0xff] }
 0x24a   : > { %v2802_v61 = vpop.eup %2801  ;;  %2141 = vst [vmem:[%s4431_s16 + $0x138] sm:$0xff] %v2077_v42  ;;  %v1894_v56 = vadd.f32 1.0, %v2800_v11  ;;  %2827 = vpow2.f32 %v2392_v15  ;;  %v1587_v43 = vpop.f32.mrf.mxu1  ;;  %v2387_v17 = vmul.f32 -1.442695, %v1566_v44 }
 0x24b   : > { %v2804_v51 = vpop.eup %2803  ;;  %v2078_v28 = vmul.f32 %v2802_v61, %v4335_v35  ;;  %2829 = vrcp.f32 %v1893_v13  ;;  %v1375_v35 = vadd.f32 %v4561_v33, %v4263_v27  ;;  %v2395_v27 = vmul.f32 -1.442695, %v1586_v3  ;;  %v4875_v61 = vld [vmem:[#allocation18_spill] sm:$0xff]  ;;  %v4883_v3 = vld [vmem:[#allocation20_spill] sm:$0xff] }
 0x24c   : > { %v2806_v58 = vpop.eup %2805  ;;  %2831 = vrcp.f32 %v1894_v56  ;;  %v1902_v50 = vadd.f32 1.0, %v2804_v51  ;;  %v1588_v41 = vadd.f32 %v1587_v43, %v1395_v60 }
 0x24d   : > { %v2808_v30 = vpop.eup %2807  ;;  %2142 = vst [vmem:[%s4431_s16 + $0x140] sm:$0xff] %v2078_v28  ;;  %v2079_v36 = vmul.f32 %v2806_v58, %v4868_v25  ;;  %2833 = vpow2.f32 %v2385_v57  ;;  %v1568_v23 = vadd.f32 %v1567_v34, %v1375_v35  ;;  %v4880_v25 = vld [vmem:[#allocation44_spill] sm:$0xff]  ;;  %v4881_v35 = vld [vmem:[#allocation29_spill] sm:$0xff] }
 0x24e   : > { %v2810_v37 = vpop.eup %2809  ;;  %2835 = vrcp.f32 %v1902_v50  ;;  %v1895_v21 = vadd.f32 1.0, %v2808_v30  ;;  %v2396_v14 = vmul.f32 -1.442695, %v1588_v41  ;;  %v4879_v30 = vld [vmem:[#allocation19_spill] sm:$0xff] }
 0x24f   : > { %v2812_v62 = vpop.eup %2811  ;;  %2143 = vst [vmem:[%s4431_s16 + $0x148] sm:$0xff] %v2079_v36  ;;  %v2080_v52 = vmul.f32 %v2810_v37, %v4344_v39  ;;  %2837 = vpow2.f32 %v2393_v45  ;;  %v2388_v32 = vmul.f32 -1.442695, %v1568_v23  ;;  %v4877_v45 = vld [vmem:[#allocation17_spill] sm:$0xff] }
 0x250   : > { %v2814_v6 = vpop.eup %2813  ;;  %2839 = vrcp.f32 %v1895_v21  ;;  %v1903_v40 = vadd.f32 1.0, %v2812_v62  ;;  %v4882_v21 = vld [vmem:[#allocation41_spill] sm:$0xff] }
 0x251   : > { %v2816_v33 = vpop.eup %2815  ;;  %2144 = vst [vmem:[%s4431_s16 + $0x150] sm:$0xff] %v2080_v52  ;;  %v2081_v31 = vmul.f32 %v2814_v6, %v4869_v55  ;;  %2841 = vpow2.f32 %v2386_v24  ;;  %v4884_v6 = vld [vmem:[#allocation45_spill] sm:$0xff]  ;;  %v4885_v55 = vld [vmem:[#allocation30_spill] sm:$0xff] }
 0x252   : > { %v2818_v39 = vpop.eup %2817  ;;  %2843 = vrcp.f32 %v1903_v40  ;;  %v1896_v59 = vadd.f32 1.0, %v2816_v33 }
 0x253   : > { %v2820_v16 = vpop.eup %2819  ;;  %2145 = vst [vmem:[%s4431_s16 + $0x158] sm:$0xff] %v2081_v31  ;;  %v2082_v63 = vmul.f32 %v2818_v39, %v4870_v1  ;;  %2845 = vpow2.f32 %v2394_v38  ;;  %v4886_v31 = vld [vmem:[#allocation42_spill] sm:$0xff] }
 0x254   : > { %v2822_v20 = vpop.eup %2821  ;;  %2847 = vrcp.f32 %v1896_v59  ;;  %v1904_v26 = vadd.f32 1.0, %v2820_v16  ;;  %v4887_v16 = vld [vmem:[#allocation23_spill] sm:$0xff]  ;;  %v4888_v1 = vld [vmem:[#allocation46_spill] sm:$0xff] }
 0x255   : > { %v2824_v0 = vpop.eup %2823  ;;  %2146 = vst [vmem:[%s4431_s16 + $0x160] sm:$0xff] %v2082_v63  ;;  %v2083_v48 = vmul.f32 %v2822_v20, %v4871_v5  ;;  %2849 = vpow2.f32 %v2387_v17 }
 0x256   : > { %v2826_v47 = vpop.eup %2825  ;;  %2851 = vrcp.f32 %v1904_v26  ;;  %v1897_v12 = vadd.f32 1.0, %v2824_v0  ;;  %v4889_v26 = vld [vmem:[#allocation31_spill] sm:$0xff] }
 0x257   : > { %v2828_v15 = vpop.eup %2827  ;;  %2147 = vst [vmem:[%s4431_s16 + $0x168] sm:$0xff] %v2083_v48  ;;  %v2084_v49 = vmul.f32 %v2826_v47, %v4872_v2  ;;  %2853 = vpow2.f32 %v2395_v27 }
 0x258   : > { %v2830_v8 = vpop.eup %2829  ;;  %2855 = vrcp.f32 %v1897_v12  ;;  %v1905_v19 = vadd.f32 1.0, %v2828_v15 }
 0x259   : > { %v2832_v29 = vpop.eup %2831  ;;  %2148 = vst [vmem:[%s4431_s16 + $0x170] sm:$0xff] %v2084_v49  ;;  %v2085_v42 = vmul.f32 %v2830_v8, %v4873_v18  ;;  %2857 = vpow2.f32 %v2388_v32 }
 0x25a   : > { %v2834_v53 = vpop.eup %2833  ;;  %v2086_v11 = vmul.f32 %v2832_v29, %v4874_v10  ;;  %2859 = vrcp.f32 %v1905_v19 }
 0x25b   : > { %v2836_v13 = vpop.eup %2835  ;;  %2149 = vst [vmem:[%s4431_s16 + $0x178] sm:$0xff] %v2085_v42  ;;  %v1898_v57 = vadd.f32 1.0, %v2834_v53  ;;  %2861 = vpow2.f32 %v2396_v14 }
 0x25c   : > { %v2838_v54 = vpop.eup %2837  ;;  %2863 = vtanh.f32 %v4875_v61  ;;  %2150 = vst [vmem:[%s4431_s16 + $0x180] sm:$0xff] %v2086_v11  ;;  %v2094_v56 = vmul.f32 %v2836_v13, %v4876_v9 }
 0x25d   : > { %v2840_v4 = vpop.eup %2839  ;;  %2865 = vrcp.f32 %v1898_v57  ;;  %v1906_v51 = vadd.f32 1.0, %v2838_v54 }
 0x25e   : > { %v2842_v28 = vpop.eup %2841  ;;  %2867 = vtanh.f32 %v4877_v45  ;;  %2158 = vst [vmem:[%s4431_s16 + $0x1c0] sm:$0xff] %v2094_v56  ;;  %v2087_v58 = vmul.f32 %v2840_v4, %v4878_v22 }
 0x25f   : > { %v2844_v46 = vpop.eup %2843  ;;  %2869 = vrcp.f32 %v1906_v51  ;;  %v1899_v50 = vadd.f32 1.0, %v2842_v28 }
 0x260   : > { %v2846_v7 = vpop.eup %2845  ;;  %2871 = vtanh.f32 %v4879_v30  ;;  %2151 = vst [vmem:[%s4431_s16 + $0x188] sm:$0xff] %v2087_v58  ;;  %v2095_v36 = vmul.f32 %v2844_v46, %v4880_v25 }
 0x261   : > { %v2848_v24 = vpop.eup %2847  ;;  %2873 = vrcp.f32 %v1899_v50  ;;  %v1907_v44 = vadd.f32 1.0, %v2846_v7 }
 0x262   : > { %v2850_v37 = vpop.eup %2849  ;;  %2875 = vtanh.f32 %v4881_v35  ;;  %2159 = vst [vmem:[%s4431_s16 + $0x1c8] sm:$0xff] %v2095_v36  ;;  %v2088_v34 = vmul.f32 %v2848_v24, %v4882_v21 }
 0x263   : > { %v2852_v62 = vpop.eup %2851  ;;  %2877 = vrcp.f32 %v1907_v44  ;;  %v1900_v52 = vadd.f32 1.0, %v2850_v37 }
 0x264   : > { %v2854_v38 = vpop.eup %2853  ;;  %2879 = vtanh.f32 %v4883_v3  ;;  %2152 = vst [vmem:[%s4431_s16 + $0x190] sm:$0xff] %v2088_v34  ;;  %v2096_v60 = vmul.f32 %v2852_v62, %v4884_v6 }
 0x265   : > { %v2856_v40 = vpop.eup %2855  ;;  %2881 = vrcp.f32 %v1900_v52  ;;  %v1908_v43 = vadd.f32 1.0, %v2854_v38 }
 0x266   : > { %v2858_v33 = vpop.eup %2857  ;;  %2883 = vtanh.f32 %v4885_v55  ;;  %2160 = vst [vmem:[%s4431_s16 + $0x1d0] sm:$0xff] %v2096_v60  ;;  %v2089_v17 = vmul.f32 %v2856_v40, %v4886_v31 }
 0x267   : > { %v2860_v23 = vpop.eup %2859  ;;  %2885 = vrcp.f32 %v1908_v43  ;;  %v1901_v39 = vadd.f32 1.0, %v2858_v33 }
 0x268   : > { %v2862_v59 = vpop.eup %2861  ;;  %2887 = vtanh.f32 %v4887_v16  ;;  %2153 = vst [vmem:[%s4431_s16 + $0x198] sm:$0xff] %v2089_v17  ;;  %v2097_v63 = vmul.f32 %v2860_v23, %v4888_v1 }
 0x269   : > { %v2864_v27 = vpop.eup %2863  ;;  %2889 = vrcp.f32 %v1901_v39  ;;  %v1909_v41 = vadd.f32 1.0, %v2862_v59 }
 0x26a   : > { %v2866_v20 = vpop.eup %2865  ;;  %2891 = vtanh.f32 %v4889_v26  ;;  %2161 = vst [vmem:[%s4431_s16 + $0x1d8] sm:$0xff] %v2097_v63 }
 0x26b   : > { %v2868_v0 = vpop.eup %2867  ;;  %v2090_v5 = vmul.f32 %v2866_v20, %v2864_v27  ;;  %2893 = vrcp.f32 %v1909_v41 }
 0x26c   : > { %v2870_v48 = vpop.eup %2869 }
 0x26d   : > { %v2872_v32 = vpop.eup %2871  ;;  %2154 = vst [vmem:[%s4431_s16 + $0x1a0] sm:$0xff] %v2090_v5  ;;  %v2098_v47 = vmul.f32 %v2870_v48, %v2868_v0 }
 0x26e   : > { %v2874_v12 = vpop.eup %2873 }
 0x26f   : > { %v2876_v15 = vpop.eup %2875  ;;  %2162 = vst [vmem:[%s4431_s16 + $0x1e0] sm:$0xff] %v2098_v47  ;;  %v2091_v2 = vmul.f32 %v2874_v12, %v2872_v32 }
 0x270   : > { %v2878_v49 = vpop.eup %2877 }
 0x271   : > { %v2880_v14 = vpop.eup %2879  ;;  %2155 = vst [vmem:[%s4431_s16 + $0x1a8] sm:$0xff] %v2091_v2  ;;  %v2099_v8 = vmul.f32 %v2878_v49, %v2876_v15 }
 0x272   : > { %v2882_v19 = vpop.eup %2881 }
 0x273   : > { %v2884_v29 = vpop.eup %2883  ;;  %2163 = vst [vmem:[%s4431_s16 + $0x1e8] sm:$0xff] %v2099_v8  ;;  %v2092_v18 = vmul.f32 %v2882_v19, %v2880_v14 }
 0x274   : > { %v2886_v42 = vpop.eup %2885 }
 0x275   : > { %v2888_v53 = vpop.eup %2887  ;;  %2156 = vst [vmem:[%s4431_s16 + $0x1b0] sm:$0xff] %v2092_v18  ;;  %v2100_v10 = vmul.f32 %v2886_v42, %v2884_v29 }
 0x276   : > { %v2890_v11 = vpop.eup %2889 }
 0x277   : > { %v2892_v13 = vpop.eup %2891  ;;  %2164 = vst [vmem:[%s4431_s16 + $0x1f0] sm:$0xff] %v2100_v10  ;;  %v2093_v57 = vmul.f32 %v2890_v11, %v2888_v53 }
 0x278   : > { %v2894_v54 = vpop.eup %2893 }
 0x279   : > { %2157 = vst [vmem:[%s4431_s16 + $0x1b8] sm:$0xff] %v2093_v57  ;;  %v2101_v61 = vmul.f32 %v2894_v54, %v2892_v13 }
 0x27b   : > { %2165 = vst [vmem:[%s4431_s16 + $0x1f8] sm:$0xff] %v2101_v61 }
 0x27c   : > { %2990 = shalt.err (!%p2987_p5)
}
 0x27d   : > { %s2991_s12 = scalar_lea.hbm %s4711_s6, 8192  ;;  %s2995_s26 = scalar_lea.hbm %s4768_s5, 16384 }
 0x27e   : > { %p2992_p3 = scmp.ne.s32.totalorder %s4711_s6, %s2991_s12  ;;  %p2996_p4 = scmp.lt.s32.totalorder %s4711_s6, %s4768_s5 }
 0x27f   : > { %p2997_p7 = scmp.lt.s32.totalorder %s2995_s26, %s2991_s12 }
 0x280   : > { %p2993_p0 = pnand %p2992_p3, %p3199_p12 }
 0x281   : > { %p2998_p11 = por %p2997_p7, %p2996_p4 }
 0x282   : > { %p2994_p1 = pneg %p2993_p0 }
 0x284   : > { %p2999_p2 = pnand %p2998_p11, %p2994_p1 }
 0x286   : > { %3002 = shalt.err (!%p2999_p2)
}
 0x287   : > { %s3073_s16 = smov 256   ;;  %s3074_s25 = smov 512  }
 0x288   : > { %s3075_s1 = smov 16  }
 0x289   : > { %2432 = dma.vmem_to_hbm [thread:$0]  (%p3199_p12), %s4713_s15, 8192, %s4711_s6, %s2167_s21, %s3073_s16, %s3074_s25, %s3075_s1  }
 0x28a PF: > { %s2198_s10 = sand.u32 1, %s3041_s18   ;;  %p4890_p6 = scmp.ge.s32.totalorder %s3061_s23, 2 }
 0x28b   : > { %s2199_s13 = scalar_lea.sflag [#allocation4], %s2198_s10 }
 0x28c   : > { %p2446_p9 = pnand %p4890_p6, %p3203_p13 }
 0x28e   : > { %p2447_p10 = pneg %p2446_p9 }
 0x290   : > { %3036 = dma.done.wait (%p2447_p10), %s2199_s13, 8192  }
 0x291   : > { %3038 = vsyncadd (%p2447_p10), %s2199_s13, 4294959104  ;;  %s22_s23 = sadd.s32 1, %s3061_s23   ;;  %s4891_s18 = smov %s3045_s19 }
 0x292   : > { %p19_p8 = scmp.ge.s32.totalorder %s22_s23, 4   ;;  %s4892_s19 = smov %s3049_s20 }
 0x293   : > { %s4893_s20 = smov %s3154_s30  ;;  %s4894_s21 = smov %s3057_s22 }
 0x294   : > { %s4895_s22 = smov %s4897_s24  ;;  %21 = sbr.rel (!%p19_p8) target bundleno = 10 (0xa), region = 108 }
 0x299   :  { %2204 = vsyncpa [#allocation3], 1 }
 0x29a   :  { %2206 = vsyncpa [#allocation3 + $0x1], 1 }
 0x29b   :  { %2207 = vsyncpa [#allocation6], 1 }
 0x29c   :  { %2209 = vsyncpa [#allocation6 + $0x1], 1 }
 0x29d   :  { %2210 = vsyncpa [#allocation4], 1 }
 0x29e   :  { %2212 = vsyncpa [#allocation4 + $0x1], 1 }

</bundles_post_ra>
